<compile_context>
chip_gen: v6e
topology: v6e:2x2x1
jax: 0.10.0
libtpu: 0.0.40
codegen_flags: <defaults>
</compile_context>

<pallas_src>
import jax
import jax.numpy as jnp
from jax.experimental import pallas as pl
from jax.experimental.pallas import tpu as pltpu

# ---------------- config (small ViT consistent with the module) -------------
B = 2
C_IN = 3
IMG = 16
PATCH = 8
HP = IMG // PATCH            # H // patch  (PyTorch's w_fmap)
WP = IMG // PATCH            # W // patch  (PyTorch's h_fmap)
N_PATCH = HP * WP            # 4
T = N_PATCH + 1              # 5 tokens incl. CLS
T_PAD = ((T + 7) // 8) * 8   # 8: pad token count to a full sublane tile
D = 32                       # embed_dim (= out_channels)
HEADS = 4
HD = D // HEADS              # 8
DEPTH = 2
D_MLP = 4 * D                # 128
EPS = 1e-6
CPP = C_IN * PATCH * PATCH   # 192
SCALE = HD ** -0.5
NEG_INF = -1e30
LANES = HEADS * T_PAD        # 32: score lanes, laid out [head, key-token]


# ---------------- in-kernel helpers ----------------
def _layernorm(x, g, b):
    # g, b are (1, D): broadcast over rows, no 1-D vector relayouts.
    mu = jnp.mean(x, axis=-1, keepdims=True)
    xc = x - mu
    var = jnp.mean(xc * xc, axis=-1, keepdims=True)
    return xc * jax.lax.rsqrt(var + EPS) * g + b


def _erf(z):
    # Abramowitz & Stegun 7.1.26 rational approximation (|err| <= 1.5e-7):
    # exact-erf GELU parity with torch.nn.GELU using only guaranteed-lowerable
    # elementwise ops.  Reciprocal kept exact (approx=False) for parity.
    a1, a2, a3, a4, a5 = (0.254829592, -0.284496736, 1.421413741,
                          -1.453152027, 1.061405429)
    p = 0.3275911
    sgn = jnp.where(z >= 0.0, 1.0, -1.0)
    az = jnp.abs(z)
    t = pl.reciprocal(1.0 + p * az, approx=False)
    poly = t * (a1 + t * (a2 + t * (a3 + t * (a4 + t * a5))))
    return sgn * (1.0 - poly * jnp.exp(-az * az))


def _gelu_erf(x):
    return 0.5 * x * (1.0 + _erf(x * 0.7071067811865476))


# ---------------- fused backbone kernel ----------------
def vit_backbone_kernel(
        patches_ref, tok_ref, maskk_ref, maskv_ref, kmask_ref, seg_ref,
        pe_w_ref,
        ln1w_ref, ln1b_ref, qkvw_ref, qkvb_ref, projw_ref, projb_ref,
        ln2w_ref, ln2b_ref, fc1w_ref, fc1b_ref, fc2w_ref, fc2b_ref,
        normw_ref, normb_ref,
        out_ref):
    # ---- patch embedding + (CLS | conv-bias+pos | 0) additive constant -----
    # tok_ref already contains: row0 = cls+pos[0]; patch rows = pe_b+pos[i];
    # pad rows = 0 (so zero `patches` rows stay exactly 0 before the blocks).
    x = jnp.dot(patches_ref[...], pe_w_ref[...],
                preferred_element_type=jnp.float32) + tok_ref[...]

    mask_k = maskk_ref[...]      # (LANES, D): 1/sqrt(hd) on in-head channels
    mask_v = maskv_ref[...]      # (LANES, D): 1.0 on in-head channels
    kmask = kmask_ref[...]       # (1, LANES): 0 / -1e30 key-padding mask
    seg = seg_ref[...]           # (LANES, LANES): block-diag ones (per head)

    # ---- transformer blocks (DEPTH small & static -> unrolled) --------------
    for l in range(DEPTH):
        # --- multi-head self-attention, all heads & batches in one shot ---
        y = _layernorm(x, ln1w_ref[l], ln1b_ref[l])
        qkv = (jnp.dot(y, qkvw_ref[l], preferred_element_type=jnp.float32)
               + qkvb_ref[l])                                   # (B*T_PAD, 3D)
        q = qkv[:, 0 * D:1 * D].reshape(B, T_PAD, D)
        k = qkv[:, 1 * D:2 * D].reshape(B, T_PAD, D)
        v = qkv[:, 2 * D:3 * D].reshape(B, T_PAD, D)

        # Head expansion: row l = h*T_PAD + j of kexp/vexp carries key/value
        # token j restricted to head h's channels.  No per-head loop, no
        # transposes, both attention contractions become batched matmuls.
        kexp = jnp.concatenate([k] * HEADS, axis=1) * mask_k[None]  # (B,LANES,D)
        vexp = jnp.concatenate([v] * HEADS, axis=1) * mask_v[None]  # (B,LANES,D)

        # scores[b, t, h*Tk+j] = scale * sum_{c in head h} q[b,t,c] k[b,j,c]
        s = jnp.einsum('btd,bld->btl', q, kexp,
                       preferred_element_type=jnp.float32)          # (B,Tq,LANES)
        s = s.reshape(B * T_PAD, LANES) + kmask                     # (16, 32)

        # Lane-dense softmax over the 8-lane key segment of each head.
        # Per-row (cross-head) max is subtracted: mathematically identical to
        # per-head max, exp args stay <= 0 (no overflow); only a pathological
        # >~80 cross-head logit spread could underflow a whole segment.
        s = s - jnp.max(s, axis=-1, keepdims=True)
        p = jnp.exp(s)
        denom = jnp.dot(p, seg, preferred_element_type=jnp.float32)  # per-head sums
        p = p * pl.reciprocal(denom, approx=False)                   # exact recip

        # ctx[b,t,c] = sum_j p[b,t,head(c)*Tk+j] * v[b,j,c]
        ctx = jnp.einsum('btl,bld->btd', p.reshape(B, T_PAD, LANES), vexp,
                         preferred_element_type=jnp.float32)         # (B,Tq,D)
        attn = (jnp.dot(ctx.reshape(B * T_PAD, D), projw_ref[l],
                        preferred_element_type=jnp.float32) + projb_ref[l])
        x = x + attn

        # --- MLP (exact-erf GELU, matches torch.nn.GELU default) ---
        y = _layernorm(x, ln2w_ref[l], ln2b_ref[l])
        h = (jnp.dot(y, fc1w_ref[l], preferred_element_type=jnp.float32)
             + fc1b_ref[l])
        h = _gelu_erf(h)
        h = (jnp.dot(h, fc2w_ref[l], preferred_element_type=jnp.float32)
             + fc2b_ref[l])
        x = x + h

    # ---- final norm; lane-dense token-major store ---------------------------
    # CLS-drop + channels-first permute happen on the 1 KB result in the
    # wrapper (removes the in-kernel 4-lane transposed stores).
    out_ref[...] = _layernorm(x, normw_ref[...], normb_ref[...])


# ---------------- wrappers ----------------
def _extract_patches_padded(x):
    # NCHW -> (B*T_PAD, C*p*p).  Row b*T_PAD+0 is the (zero) CLS slot, rows
    # 1..N_PATCH hold the flattened patches in Conv2d row-major order (same as
    # PyTorch PatchEmbed), remaining rows are zero padding (masked out of
    # attention inside the kernel).  Fused into the pallas_call launch via
    # allow_input_fusion.
    b, c, h, w = x.shape
    p = x.reshape(b, c, h // PATCH, PATCH, w // PATCH, PATCH)
    p = p.transpose(0, 2, 4, 1, 3, 5).reshape(b, N_PATCH, CPP)
    p = jnp.pad(p, ((0, 0), (1, T_PAD - 1 - N_PATCH), (0, 0)))
    return p.reshape(b * T_PAD, CPP)


def _make_constants(pe_b, cls_tok, pos_emb):
    # Everything here is input-independent -> hoisted off the TensorCore.
    tok_add = jnp.concatenate([
        cls_tok + pos_emb[0:1],                     # CLS row (patch row is 0)
        pe_b + pos_emb[1:T],                        # real patch rows
        jnp.zeros((T_PAD - T, D), jnp.float32),     # pad rows stay exactly 0
    ], axis=0)
    tok_add = jnp.tile(tok_add, (B, 1))             # (B*T_PAD, D)

    lane = jnp.arange(LANES)
    head_of_lane = lane // T_PAD                    # which head each lane is
    key_of_lane = lane % T_PAD                      # which key token
    chan_head = jnp.arange(D) // HD                 # head of each channel

    in_head = (head_of_lane[:, None] == chan_head[None, :]).astype(jnp.float32)
    mask_k = in_head * SCALE                        # (LANES, D)
    mask_v = in_head                                # (LANES, D)
    kmask = jnp.where(key_of_lane < T, 0.0, NEG_INF).astype(jnp.float32)[None, :]
    seg = (head_of_lane[:, None] == head_of_lane[None, :]).astype(jnp.float32)
    return tok_add, mask_k, mask_v, kmask, seg


@jax.jit
def vit_maskrcnn_backbone_forward(x, params):
    pe_w, pe_b, cls_tok, pos_emb, blk = params
    patches = _extract_patches_padded(x)
    tok_add, mask_k, mask_v, kmask, seg = _make_constants(pe_b, cls_tok, pos_emb)

    inputs = (patches, tok_add, mask_k, mask_v, kmask, seg, pe_w, *blk)
    o = pl.pallas_call(
        vit_backbone_kernel,
        out_shape=jax.ShapeDtypeStruct((B * T_PAD, D), jnp.float32),
        compiler_params=pltpu.CompilerParams(
            # fuse the im2col producer of `patches` (input 0) into the launch
            allow_input_fusion=[True] + [False] * (len(inputs) - 1)),
    )(*inputs)

    # (B*T_PAD, D) -> drop CLS & pad tokens, channels-first, (B, D, HP, WP).
    # Tiny (1 KB) XLA op, matches torch: permute(0,2,1), [:, :, 1:], reshape.
    o = o.reshape(B, T_PAD, D)[:, 1:1 + N_PATCH, :]
    o = jnp.transpose(o, (0, 2, 1)).reshape(B, D, HP, WP)
    return o


# ---------------- deterministic param init ----------------
def init_params(key):
    # TODO(synk): pretrained-checkpoint loading (load_pretrained_weights) has
    # no in-script equivalent; deterministic random init is used instead.
    ks = iter(jax.random.split(key, 8))
    nrm = lambda shape: 0.02 * jax.random.normal(next(ks), shape, jnp.float32)
    w16 = lambda shape: nrm(shape).astype(jnp.bfloat16)   # bf16 weight stack

    pe_w = w16((CPP, D))                        # Conv2d weight as (C*p*p, D)
    pe_b = jnp.zeros((1, D), jnp.float32)
    cls_tok = nrm((1, D))
    pos_emb = nrm((T, D))

    blk = (
        jnp.ones((DEPTH, 1, D), jnp.float32),    # ln1 weight
        jnp.zeros((DEPTH, 1, D), jnp.float32),   # ln1 bias
        w16((DEPTH, D, 3 * D)),                  # qkv weight (bf16)
        jnp.zeros((DEPTH, 1, 3 * D), jnp.float32),
        w16((DEPTH, D, D)),                      # attn proj weight (bf16)
        jnp.zeros((DEPTH, 1, D), jnp.float32),
        jnp.ones((DEPTH, 1, D), jnp.float32),    # ln2 weight
        jnp.zeros((DEPTH, 1, D), jnp.float32),   # ln2 bias
        w16((DEPTH, D, D_MLP)),                  # fc1 (bf16)
        jnp.zeros((DEPTH, 1, D_MLP), jnp.float32),
        w16((DEPTH, D_MLP, D)),                  # fc2 (bf16)
        jnp.zeros((DEPTH, 1, D), jnp.float32),
        jnp.ones((1, D), jnp.float32),           # final norm weight
        jnp.zeros((1, D), jnp.float32),          # final norm bias
    )
    return (pe_w, pe_b, cls_tok, pos_emb, blk)


if __name__ == "__main__":
    key = jax.random.PRNGKey(0)
    k_x, k_p = jax.random.split(key)
    x = jax.random.normal(k_x, (B, C_IN, IMG, IMG), jnp.float32)
    params = init_params(k_p)

    out = vit_maskrcnn_backbone_forward(x, params)
    out = jax.block_until_ready(out)
    assert out.shape == (B, D, HP, WP), out.shape
    assert bool(jnp.all(jnp.isfinite(out))), "non-finite output"
    print("KERNEL_OK")
</pallas_src>

<mosaic_0001>
module attributes {stable_mosaic.version = 11 : i64} {
  func.func @vit_backbone_kernel(%arg0: memref<16x192xf32, #tpu.memory_space<vmem>>, %arg1: memref<16x32xf32, #tpu.memory_space<vmem>>, %arg2: memref<32x32xf32, #tpu.memory_space<vmem>>, %arg3: memref<32x32xf32, #tpu.memory_space<vmem>>, %arg4: memref<1x32xf32, #tpu.memory_space<vmem>>, %arg5: memref<32x32xf32, #tpu.memory_space<vmem>>, %arg6: memref<192x32xbf16, #tpu.memory_space<vmem>>, %arg7: memref<2x1x32xf32, #tpu.memory_space<vmem>>, %arg8: memref<2x1x32xf32, #tpu.memory_space<vmem>>, %arg9: memref<2x32x96xbf16, #tpu.memory_space<vmem>>, %arg10: memref<2x1x96xf32, #tpu.memory_space<vmem>>, %arg11: memref<2x32x32xbf16, #tpu.memory_space<vmem>>, %arg12: memref<2x1x32xf32, #tpu.memory_space<vmem>>, %arg13: memref<2x1x32xf32, #tpu.memory_space<vmem>>, %arg14: memref<2x1x32xf32, #tpu.memory_space<vmem>>, %arg15: memref<2x32x128xbf16, #tpu.memory_space<vmem>>, %arg16: memref<2x1x128xf32, #tpu.memory_space<vmem>>, %arg17: memref<2x128x32xbf16, #tpu.memory_space<vmem>>, %arg18: memref<2x1x32xf32, #tpu.memory_space<vmem>>, %arg19: memref<1x32xf32, #tpu.memory_space<vmem>>, %arg20: memref<1x32xf32, #tpu.memory_space<vmem>>, %arg21: memref<16x32xf32, #tpu.memory_space<vmem>>) attributes {dimension_semantics = [], scalar_prefetch = 0 : i64, scratch_operands = 0 : i64, tpu.core_type = #tpu.core_type<tc>} {
    %c0 = arith.constant 0 : index
    %c0_0 = arith.constant 0 : index
    %0 = vector.load %arg0[%c0, %c0_0] : memref<16x192xf32, #tpu.memory_space<vmem>>, vector<16x192xf32>
    %c0_1 = arith.constant 0 : index
    %c0_2 = arith.constant 0 : index
    %1 = vector.load %arg6[%c0_1, %c0_2] : memref<192x32xbf16, #tpu.memory_space<vmem>>, vector<192x32xbf16>
    %cst = arith.constant dense<0.000000e+00> : vector<16x32xf32>
    %2 = tpu.matmul %0, %1, %cst {dimension_numbers = #tpu.dot_dimension_numbers<[1], [0], [0], [1], [0, 0, 1, 1], [], []>} : vector<16x192xf32>, vector<192x32xbf16>, vector<16x32xf32> -> vector<16x32xf32>
    %c0_3 = arith.constant 0 : index
    %c0_4 = arith.constant 0 : index
    %3 = vector.load %arg1[%c0_3, %c0_4] : memref<16x32xf32, #tpu.memory_space<vmem>>, vector<16x32xf32>
    %4 = arith.addf %2, %3 : vector<16x32xf32>
    %c0_5 = arith.constant 0 : index
    %c0_6 = arith.constant 0 : index
    %5 = vector.load %arg2[%c0_5, %c0_6] : memref<32x32xf32, #tpu.memory_space<vmem>>, vector<32x32xf32>
    %c0_7 = arith.constant 0 : index
    %c0_8 = arith.constant 0 : index
    %6 = vector.load %arg3[%c0_7, %c0_8] : memref<32x32xf32, #tpu.memory_space<vmem>>, vector<32x32xf32>
    %c0_9 = arith.constant 0 : index
    %c0_10 = arith.constant 0 : index
    %7 = vector.load %arg4[%c0_9, %c0_10] : memref<1x32xf32, #tpu.memory_space<vmem>>, vector<1x32xf32>
    %c0_11 = arith.constant 0 : index
    %c0_12 = arith.constant 0 : index
    %8 = vector.load %arg5[%c0_11, %c0_12] : memref<32x32xf32, #tpu.memory_space<vmem>>, vector<32x32xf32>
    %c0_13 = arith.constant 0 : index
    %c0_14 = arith.constant 0 : index
    %c0_15 = arith.constant 0 : index
    %9 = vector.load %arg7[%c0_13, %c0_14, %c0_15] : memref<2x1x32xf32, #tpu.memory_space<vmem>>, vector<1x1x32xf32>
    %10 = vector.shape_cast %9 : vector<1x1x32xf32> to vector<1x32xf32>
    %c0_16 = arith.constant 0 : index
    %c0_17 = arith.constant 0 : index
    %c0_18 = arith.constant 0 : index
    %11 = vector.load %arg8[%c0_16, %c0_17, %c0_18] : memref<2x1x32xf32, #tpu.memory_space<vmem>>, vector<1x1x32xf32>
    %12 = vector.shape_cast %11 : vector<1x1x32xf32> to vector<1x32xf32>
    %cst_19 = arith.constant dense<0.000000e+00> : vector<16xf32>
    %13 = vector.multi_reduction <add>, %4, %cst_19 [1] : vector<16x32xf32> to vector<16xf32>
    %14 = vector.shape_cast %13 : vector<16xf32> to vector<16x1xf32>
    %cst_20 = arith.constant 3.200000e+01 : f32
    %15 = vector.broadcast %cst_20 : f32 to vector<16x1xf32>
    %16 = arith.divf %14, %15 : vector<16x1xf32>
    %17 = vector.broadcast %16 : vector<16x1xf32> to vector<16x32xf32>
    %18 = arith.subf %4, %17 : vector<16x32xf32>
    %19 = arith.mulf %18, %18 : vector<16x32xf32>
    %cst_21 = arith.constant dense<0.000000e+00> : vector<16xf32>
    %20 = vector.multi_reduction <add>, %19, %cst_21 [1] : vector<16x32xf32> to vector<16xf32>
    %21 = vector.shape_cast %20 : vector<16xf32> to vector<16x1xf32>
    %cst_22 = arith.constant 3.200000e+01 : f32
    %22 = vector.broadcast %cst_22 : f32 to vector<16x1xf32>
    %23 = arith.divf %21, %22 : vector<16x1xf32>
    %cst_23 = arith.constant 9.99999997E-7 : f32
    %24 = vector.broadcast %cst_23 : f32 to vector<16x1xf32>
    %25 = arith.addf %23, %24 : vector<16x1xf32>
    %26 = math.rsqrt %25 : vector<16x1xf32>
    %27 = vector.broadcast %26 : vector<16x1xf32> to vector<16x32xf32>
    %28 = arith.mulf %18, %27 : vector<16x32xf32>
    %29 = vector.broadcast %10 : vector<1x32xf32> to vector<16x32xf32>
    %30 = arith.mulf %28, %29 : vector<16x32xf32>
    %31 = vector.broadcast %12 : vector<1x32xf32> to vector<16x32xf32>
    %32 = arith.addf %30, %31 : vector<16x32xf32>
    %c0_24 = arith.constant 0 : index
    %c0_25 = arith.constant 0 : index
    %c0_26 = arith.constant 0 : index
    %33 = vector.load %arg9[%c0_24, %c0_25, %c0_26] : memref<2x32x96xbf16, #tpu.memory_space<vmem>>, vector<1x32x96xbf16>
    %34 = vector.shape_cast %33 : vector<1x32x96xbf16> to vector<32x96xbf16>
    %cst_27 = arith.constant dense<0.000000e+00> : vector<16x96xf32>
    %35 = tpu.matmul %32, %34, %cst_27 {dimension_numbers = #tpu.dot_dimension_numbers<[1], [0], [0], [1], [0, 0, 1, 1], [], []>} : vector<16x32xf32>, vector<32x96xbf16>, vector<16x96xf32> -> vector<16x96xf32>
    %c0_28 = arith.constant 0 : index
    %c0_29 = arith.constant 0 : index
    %c0_30 = arith.constant 0 : index
    %36 = vector.load %arg10[%c0_28, %c0_29, %c0_30] : memref<2x1x96xf32, #tpu.memory_space<vmem>>, vector<1x1x96xf32>
    %37 = vector.shape_cast %36 : vector<1x1x96xf32> to vector<1x96xf32>
    %38 = vector.broadcast %37 : vector<1x96xf32> to vector<16x96xf32>
    %39 = arith.addf %35, %38 : vector<16x96xf32>
    %40 = vector.extract_strided_slice %39 {offsets = [0, 0], sizes = [16, 32], strides = [1, 1]} : vector<16x96xf32> to vector<16x32xf32>
    %41 = vector.shape_cast %40 : vector<16x32xf32> to vector<2x8x32xf32>
    %42 = vector.extract_strided_slice %39 {offsets = [0, 32], sizes = [16, 32], strides = [1, 1]} : vector<16x96xf32> to vector<16x32xf32>
    %43 = vector.shape_cast %42 : vector<16x32xf32> to vector<2x8x32xf32>
    %44 = vector.extract_strided_slice %39 {offsets = [0, 64], sizes = [16, 32], strides = [1, 1]} : vector<16x96xf32> to vector<16x32xf32>
    %45 = vector.shape_cast %44 : vector<16x32xf32> to vector<2x8x32xf32>
    %46 = tpu.concatenate %43, %43, %43, %43 in 1 : vector<2x8x32xf32>, vector<2x8x32xf32>, vector<2x8x32xf32>, vector<2x8x32xf32> -> vector<2x32x32xf32>
    %47 = vector.shape_cast %5 : vector<32x32xf32> to vector<1x32x32xf32>
    %48 = vector.broadcast %47 : vector<1x32x32xf32> to vector<2x32x32xf32>
    %49 = arith.mulf %46, %48 : vector<2x32x32xf32>
    %50 = tpu.concatenate %45, %45, %45, %45 in 1 : vector<2x8x32xf32>, vector<2x8x32xf32>, vector<2x8x32xf32>, vector<2x8x32xf32> -> vector<2x32x32xf32>
    %51 = vector.shape_cast %6 : vector<32x32xf32> to vector<1x32x32xf32>
    %52 = vector.broadcast %51 : vector<1x32x32xf32> to vector<2x32x32xf32>
    %53 = arith.mulf %50, %52 : vector<2x32x32xf32>
    "tpu.trace_start"() <{level = 10 : i32, message = "btd,bld->btl"}> : () -> ()
    %cst_31 = arith.constant dense<0.000000e+00> : vector<2x8x32xf32>
    %54 = tpu.matmul %41, %49, %cst_31 {dimension_numbers = #tpu.dot_dimension_numbers<[2], [2], [1], [1], [0, 0, 0, 1, 1, 1], [0], [0]>} : vector<2x8x32xf32>, vector<2x32x32xf32>, vector<2x8x32xf32> -> vector<2x8x32xf32>
    "tpu.trace_stop"() : () -> ()
    %55 = vector.shape_cast %54 : vector<2x8x32xf32> to vector<16x32xf32>
    %56 = vector.broadcast %7 : vector<1x32xf32> to vector<16x32xf32>
    %57 = arith.addf %55, %56 : vector<16x32xf32>
    %cst_32 = arith.constant dense<0xFF800000> : vector<16xf32>
    %58 = vector.multi_reduction <maximumf>, %57, %cst_32 [1] : vector<16x32xf32> to vector<16xf32>
    %59 = vector.shape_cast %58 : vector<16xf32> to vector<16x1xf32>
    %60 = vector.broadcast %59 : vector<16x1xf32> to vector<16x32xf32>
    %61 = arith.subf %57, %60 : vector<16x32xf32>
    %62 = math.exp %61 : vector<16x32xf32>
    %cst_33 = arith.constant dense<0.000000e+00> : vector<16x32xf32>
    %63 = tpu.matmul %62, %8, %cst_33 {dimension_numbers = #tpu.dot_dimension_numbers<[1], [0], [0], [1], [0, 0, 1, 1], [], []>} : vector<16x32xf32>, vector<32x32xf32>, vector<16x32xf32> -> vector<16x32xf32>
    %64 = tpu.reciprocal %63 : vector<16x32xf32> -> vector<16x32xf32>
    %65 = arith.mulf %62, %64 : vector<16x32xf32>
    %66 = vector.shape_cast %65 : vector<16x32xf32> to vector<2x8x32xf32>
    "tpu.trace_start"() <{level = 10 : i32, message = "btl,bld->btd"}> : () -> ()
    %cst_34 = arith.constant dense<0.000000e+00> : vector<2x8x32xf32>
    %67 = tpu.matmul %66, %53, %cst_34 {dimension_numbers = #tpu.dot_dimension_numbers<[2], [1], [1], [2], [0, 0, 0, 1, 1, 2], [0], [0]>} : vector<2x8x32xf32>, vector<2x32x32xf32>, vector<2x8x32xf32> -> vector<2x8x32xf32>
    "tpu.trace_stop"() : () -> ()
    %68 = vector.shape_cast %67 : vector<2x8x32xf32> to vector<16x32xf32>
    %c0_35 = arith.constant 0 : index
    %c0_36 = arith.constant 0 : index
    %c0_37 = arith.constant 0 : index
    %69 = vector.load %arg11[%c0_35, %c0_36, %c0_37] : memref<2x32x32xbf16, #tpu.memory_space<vmem>>, vector<1x32x32xbf16>
    %70 = vector.shape_cast %69 : vector<1x32x32xbf16> to vector<32x32xbf16>
    %cst_38 = arith.constant dense<0.000000e+00> : vector<16x32xf32>
    %71 = tpu.matmul %68, %70, %cst_38 {dimension_numbers = #tpu.dot_dimension_numbers<[1], [0], [0], [1], [0, 0, 1, 1], [], []>} : vector<16x32xf32>, vector<32x32xbf16>, vector<16x32xf32> -> vector<16x32xf32>
    %c0_39 = arith.constant 0 : index
    %c0_40 = arith.constant 0 : index
    %c0_41 = arith.constant 0 : index
    %72 = vector.load %arg12[%c0_39, %c0_40, %c0_41] : memref<2x1x32xf32, #tpu.memory_space<vmem>>, vector<1x1x32xf32>
    %73 = vector.shape_cast %72 : vector<1x1x32xf32> to vector<1x32xf32>
    %74 = vector.broadcast %73 : vector<1x32xf32> to vector<16x32xf32>
    %75 = arith.addf %71, %74 : vector<16x32xf32>
    %76 = arith.addf %4, %75 : vector<16x32xf32>
    %c0_42 = arith.constant 0 : index
    %c0_43 = arith.constant 0 : index
    %c0_44 = arith.constant 0 : index
    %77 = vector.load %arg13[%c0_42, %c0_43, %c0_44] : memref<2x1x32xf32, #tpu.memory_space<vmem>>, vector<1x1x32xf32>
    %78 = vector.shape_cast %77 : vector<1x1x32xf32> to vector<1x32xf32>
    %c0_45 = arith.constant 0 : index
    %c0_46 = arith.constant 0 : index
    %c0_47 = arith.constant 0 : index
    %79 = vector.load %arg14[%c0_45, %c0_46, %c0_47] : memref<2x1x32xf32, #tpu.memory_space<vmem>>, vector<1x1x32xf32>
    %80 = vector.shape_cast %79 : vector<1x1x32xf32> to vector<1x32xf32>
    %cst_48 = arith.constant dense<0.000000e+00> : vector<16xf32>
    %81 = vector.multi_reduction <add>, %76, %cst_48 [1] : vector<16x32xf32> to vector<16xf32>
    %82 = vector.shape_cast %81 : vector<16xf32> to vector<16x1xf32>
    %cst_49 = arith.constant 3.200000e+01 : f32
    %83 = vector.broadcast %cst_49 : f32 to vector<16x1xf32>
    %84 = arith.divf %82, %83 : vector<16x1xf32>
    %85 = vector.broadcast %84 : vector<16x1xf32> to vector<16x32xf32>
    %86 = arith.subf %76, %85 : vector<16x32xf32>
    %87 = arith.mulf %86, %86 : vector<16x32xf32>
    %cst_50 = arith.constant dense<0.000000e+00> : vector<16xf32>
    %88 = vector.multi_reduction <add>, %87, %cst_50 [1] : vector<16x32xf32> to vector<16xf32>
    %89 = vector.shape_cast %88 : vector<16xf32> to vector<16x1xf32>
    %cst_51 = arith.constant 3.200000e+01 : f32
    %90 = vector.broadcast %cst_51 : f32 to vector<16x1xf32>
    %91 = arith.divf %89, %90 : vector<16x1xf32>
    %cst_52 = arith.constant 9.99999997E-7 : f32
    %92 = vector.broadcast %cst_52 : f32 to vector<16x1xf32>
    %93 = arith.addf %91, %92 : vector<16x1xf32>
    %94 = math.rsqrt %93 : vector<16x1xf32>
    %95 = vector.broadcast %94 : vector<16x1xf32> to vector<16x32xf32>
    %96 = arith.mulf %86, %95 : vector<16x32xf32>
    %97 = vector.broadcast %78 : vector<1x32xf32> to vector<16x32xf32>
    %98 = arith.mulf %96, %97 : vector<16x32xf32>
    %99 = vector.broadcast %80 : vector<1x32xf32> to vector<16x32xf32>
    %100 = arith.addf %98, %99 : vector<16x32xf32>
    %c0_53 = arith.constant 0 : index
    %c0_54 = arith.constant 0 : index
    %c0_55 = arith.constant 0 : index
    %101 = vector.load %arg15[%c0_53, %c0_54, %c0_55] : memref<2x32x128xbf16, #tpu.memory_space<vmem>>, vector<1x32x128xbf16>
    %102 = vector.shape_cast %101 : vector<1x32x128xbf16> to vector<32x128xbf16>
    %cst_56 = arith.constant dense<0.000000e+00> : vector<16x128xf32>
    %103 = tpu.matmul %100, %102, %cst_56 {dimension_numbers = #tpu.dot_dimension_numbers<[1], [0], [0], [1], [0, 0, 1, 1], [], []>} : vector<16x32xf32>, vector<32x128xbf16>, vector<16x128xf32> -> vector<16x128xf32>
    %c0_57 = arith.constant 0 : index
    %c0_58 = arith.constant 0 : index
    %c0_59 = arith.constant 0 : index
    %104 = vector.load %arg16[%c0_57, %c0_58, %c0_59] : memref<2x1x128xf32, #tpu.memory_space<vmem>>, vector<1x1x128xf32>
    %105 = vector.shape_cast %104 : vector<1x1x128xf32> to vector<1x128xf32>
    %106 = vector.broadcast %105 : vector<1x128xf32> to vector<16x128xf32>
    %107 = arith.addf %103, %106 : vector<16x128xf32>
    %cst_60 = arith.constant 5.000000e-01 : f32
    %108 = vector.broadcast %cst_60 : f32 to vector<16x128xf32>
    %109 = arith.mulf %108, %107 : vector<16x128xf32>
    %cst_61 = arith.constant 0.707106769 : f32
    %110 = vector.broadcast %cst_61 : f32 to vector<16x128xf32>
    %111 = arith.mulf %107, %110 : vector<16x128xf32>
    %cst_62 = arith.constant 0.000000e+00 : f32
    %112 = vector.broadcast %cst_62 : f32 to vector<16x128xf32>
    %113 = arith.cmpf oge, %111, %112 : vector<16x128xf32>
    %cst_63 = arith.constant 1.000000e+00 : f32
    %cst_64 = arith.constant -1.000000e+00 : f32
    %114 = vector.broadcast %cst_63 : f32 to vector<16x128xf32>
    %115 = vector.broadcast %cst_64 : f32 to vector<16x128xf32>
    %116 = arith.select %113, %114, %115 : vector<16x128xi1>, vector<16x128xf32>
    %117 = math.absf %111 : vector<16x128xf32>
    %cst_65 = arith.constant 0.327591091 : f32
    %118 = vector.broadcast %cst_65 : f32 to vector<16x128xf32>
    %119 = arith.mulf %118, %117 : vector<16x128xf32>
    %cst_66 = arith.constant 1.000000e+00 : f32
    %120 = vector.broadcast %cst_66 : f32 to vector<16x128xf32>
    %121 = arith.addf %120, %119 : vector<16x128xf32>
    %122 = tpu.reciprocal %121 : vector<16x128xf32> -> vector<16x128xf32>
    %cst_67 = arith.constant 1.06140542 : f32
    %123 = vector.broadcast %cst_67 : f32 to vector<16x128xf32>
    %124 = arith.mulf %122, %123 : vector<16x128xf32>
    %cst_68 = arith.constant -1.45315206 : f32
    %125 = vector.broadcast %cst_68 : f32 to vector<16x128xf32>
    %126 = arith.addf %125, %124 : vector<16x128xf32>
    %127 = arith.mulf %122, %126 : vector<16x128xf32>
    %cst_69 = arith.constant 1.42141378 : f32
    %128 = vector.broadcast %cst_69 : f32 to vector<16x128xf32>
    %129 = arith.addf %128, %127 : vector<16x128xf32>
    %130 = arith.mulf %122, %129 : vector<16x128xf32>
    %cst_70 = arith.constant -0.284496725 : f32
    %131 = vector.broadcast %cst_70 : f32 to vector<16x128xf32>
    %132 = arith.addf %131, %130 : vector<16x128xf32>
    %133 = arith.mulf %122, %132 : vector<16x128xf32>
    %cst_71 = arith.constant 0.254829586 : f32
    %134 = vector.broadcast %cst_71 : f32 to vector<16x128xf32>
    %135 = arith.addf %134, %133 : vector<16x128xf32>
    %136 = arith.mulf %122, %135 : vector<16x128xf32>
    %cst_72 = arith.constant 0.000000e+00 : f32
    %137 = vector.broadcast %cst_72 : f32 to vector<16x128xf32>
    %138 = arith.subf %137, %117 : vector<16x128xf32>
    %139 = arith.mulf %138, %117 : vector<16x128xf32>
    %140 = math.exp %139 : vector<16x128xf32>
    %141 = arith.mulf %136, %140 : vector<16x128xf32>
    %cst_73 = arith.constant 1.000000e+00 : f32
    %142 = vector.broadcast %cst_73 : f32 to vector<16x128xf32>
    %143 = arith.subf %142, %141 : vector<16x128xf32>
    %144 = arith.mulf %116, %143 : vector<16x128xf32>
    %cst_74 = arith.constant 1.000000e+00 : f32
    %145 = vector.broadcast %cst_74 : f32 to vector<16x128xf32>
    %146 = arith.addf %145, %144 : vector<16x128xf32>
    %147 = arith.mulf %109, %146 : vector<16x128xf32>
    %c0_75 = arith.constant 0 : index
    %c0_76 = arith.constant 0 : index
    %c0_77 = arith.constant 0 : index
    %148 = vector.load %arg17[%c0_75, %c0_76, %c0_77] : memref<2x128x32xbf16, #tpu.memory_space<vmem>>, vector<1x128x32xbf16>
    %149 = vector.shape_cast %148 : vector<1x128x32xbf16> to vector<128x32xbf16>
    %cst_78 = arith.constant dense<0.000000e+00> : vector<16x32xf32>
    %150 = tpu.matmul %147, %149, %cst_78 {dimension_numbers = #tpu.dot_dimension_numbers<[1], [0], [0], [1], [0, 0, 1, 1], [], []>} : vector<16x128xf32>, vector<128x32xbf16>, vector<16x32xf32> -> vector<16x32xf32>
    %c0_79 = arith.constant 0 : index
    %c0_80 = arith.constant 0 : index
    %c0_81 = arith.constant 0 : index
    %151 = vector.load %arg18[%c0_79, %c0_80, %c0_81] : memref<2x1x32xf32, #tpu.memory_space<vmem>>, vector<1x1x32xf32>
    %152 = vector.shape_cast %151 : vector<1x1x32xf32> to vector<1x32xf32>
    %153 = vector.broadcast %152 : vector<1x32xf32> to vector<16x32xf32>
    %154 = arith.addf %150, %153 : vector<16x32xf32>
    %155 = arith.addf %76, %154 : vector<16x32xf32>
    %c1 = arith.constant 1 : index
    %c0_82 = arith.constant 0 : index
    %c0_83 = arith.constant 0 : index
    %156 = vector.load %arg7[%c1, %c0_82, %c0_83] : memref<2x1x32xf32, #tpu.memory_space<vmem>>, vector<1x1x32xf32>
    %157 = vector.shape_cast %156 : vector<1x1x32xf32> to vector<1x32xf32>
    %c1_84 = arith.constant 1 : index
    %c0_85 = arith.constant 0 : index
    %c0_86 = arith.constant 0 : index
    %158 = vector.load %arg8[%c1_84, %c0_85, %c0_86] : memref<2x1x32xf32, #tpu.memory_space<vmem>>, vector<1x1x32xf32>
    %159 = vector.shape_cast %158 : vector<1x1x32xf32> to vector<1x32xf32>
    %cst_87 = arith.constant dense<0.000000e+00> : vector<16xf32>
    %160 = vector.multi_reduction <add>, %155, %cst_87 [1] : vector<16x32xf32> to vector<16xf32>
    %161 = vector.shape_cast %160 : vector<16xf32> to vector<16x1xf32>
    %cst_88 = arith.constant 3.200000e+01 : f32
    %162 = vector.broadcast %cst_88 : f32 to vector<16x1xf32>
    %163 = arith.divf %161, %162 : vector<16x1xf32>
    %164 = vector.broadcast %163 : vector<16x1xf32> to vector<16x32xf32>
    %165 = arith.subf %155, %164 : vector<16x32xf32>
    %166 = arith.mulf %165, %165 : vector<16x32xf32>
    %cst_89 = arith.constant dense<0.000000e+00> : vector<16xf32>
    %167 = vector.multi_reduction <add>, %166, %cst_89 [1] : vector<16x32xf32> to vector<16xf32>
    %168 = vector.shape_cast %167 : vector<16xf32> to vector<16x1xf32>
    %cst_90 = arith.constant 3.200000e+01 : f32
    %169 = vector.broadcast %cst_90 : f32 to vector<16x1xf32>
    %170 = arith.divf %168, %169 : vector<16x1xf32>
    %cst_91 = arith.constant 9.99999997E-7 : f32
    %171 = vector.broadcast %cst_91 : f32 to vector<16x1xf32>
    %172 = arith.addf %170, %171 : vector<16x1xf32>
    %173 = math.rsqrt %172 : vector<16x1xf32>
    %174 = vector.broadcast %173 : vector<16x1xf32> to vector<16x32xf32>
    %175 = arith.mulf %165, %174 : vector<16x32xf32>
    %176 = vector.broadcast %157 : vector<1x32xf32> to vector<16x32xf32>
    %177 = arith.mulf %175, %176 : vector<16x32xf32>
    %178 = vector.broadcast %159 : vector<1x32xf32> to vector<16x32xf32>
    %179 = arith.addf %177, %178 : vector<16x32xf32>
    %c1_92 = arith.constant 1 : index
    %c0_93 = arith.constant 0 : index
    %c0_94 = arith.constant 0 : index
    %180 = vector.load %arg9[%c1_92, %c0_93, %c0_94] : memref<2x32x96xbf16, #tpu.memory_space<vmem>>, vector<1x32x96xbf16>
    %181 = vector.shape_cast %180 : vector<1x32x96xbf16> to vector<32x96xbf16>
    %cst_95 = arith.constant dense<0.000000e+00> : vector<16x96xf32>
    %182 = tpu.matmul %179, %181, %cst_95 {dimension_numbers = #tpu.dot_dimension_numbers<[1], [0], [0], [1], [0, 0, 1, 1], [], []>} : vector<16x32xf32>, vector<32x96xbf16>, vector<16x96xf32> -> vector<16x96xf32>
    %c1_96 = arith.constant 1 : index
    %c0_97 = arith.constant 0 : index
    %c0_98 = arith.constant 0 : index
    %183 = vector.load %arg10[%c1_96, %c0_97, %c0_98] : memref<2x1x96xf32, #tpu.memory_space<vmem>>, vector<1x1x96xf32>
    %184 = vector.shape_cast %183 : vector<1x1x96xf32> to vector<1x96xf32>
    %185 = vector.broadcast %184 : vector<1x96xf32> to vector<16x96xf32>
    %186 = arith.addf %182, %185 : vector<16x96xf32>
    %187 = vector.extract_strided_slice %186 {offsets = [0, 0], sizes = [16, 32], strides = [1, 1]} : vector<16x96xf32> to vector<16x32xf32>
    %188 = vector.shape_cast %187 : vector<16x32xf32> to vector<2x8x32xf32>
    %189 = vector.extract_strided_slice %186 {offsets = [0, 32], sizes = [16, 32], strides = [1, 1]} : vector<16x96xf32> to vector<16x32xf32>
    %190 = vector.shape_cast %189 : vector<16x32xf32> to vector<2x8x32xf32>
    %191 = vector.extract_strided_slice %186 {offsets = [0, 64], sizes = [16, 32], strides = [1, 1]} : vector<16x96xf32> to vector<16x32xf32>
    %192 = vector.shape_cast %191 : vector<16x32xf32> to vector<2x8x32xf32>
    %193 = tpu.concatenate %190, %190, %190, %190 in 1 : vector<2x8x32xf32>, vector<2x8x32xf32>, vector<2x8x32xf32>, vector<2x8x32xf32> -> vector<2x32x32xf32>
    %194 = vector.shape_cast %5 : vector<32x32xf32> to vector<1x32x32xf32>
    %195 = vector.broadcast %194 : vector<1x32x32xf32> to vector<2x32x32xf32>
    %196 = arith.mulf %193, %195 : vector<2x32x32xf32>
    %197 = tpu.concatenate %192, %192, %192, %192 in 1 : vector<2x8x32xf32>, vector<2x8x32xf32>, vector<2x8x32xf32>, vector<2x8x32xf32> -> vector<2x32x32xf32>
    %198 = vector.shape_cast %6 : vector<32x32xf32> to vector<1x32x32xf32>
    %199 = vector.broadcast %198 : vector<1x32x32xf32> to vector<2x32x32xf32>
    %200 = arith.mulf %197, %199 : vector<2x32x32xf32>
    "tpu.trace_start"() <{level = 10 : i32, message = "btd,bld->btl"}> : () -> ()
    %cst_99 = arith.constant dense<0.000000e+00> : vector<2x8x32xf32>
    %201 = tpu.matmul %188, %196, %cst_99 {dimension_numbers = #tpu.dot_dimension_numbers<[2], [2], [1], [1], [0, 0, 0, 1, 1, 1], [0], [0]>} : vector<2x8x32xf32>, vector<2x32x32xf32>, vector<2x8x32xf32> -> vector<2x8x32xf32>
    "tpu.trace_stop"() : () -> ()
    %202 = vector.shape_cast %201 : vector<2x8x32xf32> to vector<16x32xf32>
    %203 = vector.broadcast %7 : vector<1x32xf32> to vector<16x32xf32>
    %204 = arith.addf %202, %203 : vector<16x32xf32>
    %cst_100 = arith.constant dense<0xFF800000> : vector<16xf32>
    %205 = vector.multi_reduction <maximumf>, %204, %cst_100 [1] : vector<16x32xf32> to vector<16xf32>
    %206 = vector.shape_cast %205 : vector<16xf32> to vector<16x1xf32>
    %207 = vector.broadcast %206 : vector<16x1xf32> to vector<16x32xf32>
    %208 = arith.subf %204, %207 : vector<16x32xf32>
    %209 = math.exp %208 : vector<16x32xf32>
    %cst_101 = arith.constant dense<0.000000e+00> : vector<16x32xf32>
    %210 = tpu.matmul %209, %8, %cst_101 {dimension_numbers = #tpu.dot_dimension_numbers<[1], [0], [0], [1], [0, 0, 1, 1], [], []>} : vector<16x32xf32>, vector<32x32xf32>, vector<16x32xf32> -> vector<16x32xf32>
    %211 = tpu.reciprocal %210 : vector<16x32xf32> -> vector<16x32xf32>
    %212 = arith.mulf %209, %211 : vector<16x32xf32>
    %213 = vector.shape_cast %212 : vector<16x32xf32> to vector<2x8x32xf32>
    "tpu.trace_start"() <{level = 10 : i32, message = "btl,bld->btd"}> : () -> ()
    %cst_102 = arith.constant dense<0.000000e+00> : vector<2x8x32xf32>
    %214 = tpu.matmul %213, %200, %cst_102 {dimension_numbers = #tpu.dot_dimension_numbers<[2], [1], [1], [2], [0, 0, 0, 1, 1, 2], [0], [0]>} : vector<2x8x32xf32>, vector<2x32x32xf32>, vector<2x8x32xf32> -> vector<2x8x32xf32>
    "tpu.trace_stop"() : () -> ()
    %215 = vector.shape_cast %214 : vector<2x8x32xf32> to vector<16x32xf32>
    %c1_103 = arith.constant 1 : index
    %c0_104 = arith.constant 0 : index
    %c0_105 = arith.constant 0 : index
    %216 = vector.load %arg11[%c1_103, %c0_104, %c0_105] : memref<2x32x32xbf16, #tpu.memory_space<vmem>>, vector<1x32x32xbf16>
    %217 = vector.shape_cast %216 : vector<1x32x32xbf16> to vector<32x32xbf16>
    %cst_106 = arith.constant dense<0.000000e+00> : vector<16x32xf32>
    %218 = tpu.matmul %215, %217, %cst_106 {dimension_numbers = #tpu.dot_dimension_numbers<[1], [0], [0], [1], [0, 0, 1, 1], [], []>} : vector<16x32xf32>, vector<32x32xbf16>, vector<16x32xf32> -> vector<16x32xf32>
    %c1_107 = arith.constant 1 : index
    %c0_108 = arith.constant 0 : index
    %c0_109 = arith.constant 0 : index
    %219 = vector.load %arg12[%c1_107, %c0_108, %c0_109] : memref<2x1x32xf32, #tpu.memory_space<vmem>>, vector<1x1x32xf32>
    %220 = vector.shape_cast %219 : vector<1x1x32xf32> to vector<1x32xf32>
    %221 = vector.broadcast %220 : vector<1x32xf32> to vector<16x32xf32>
    %222 = arith.addf %218, %221 : vector<16x32xf32>
    %223 = arith.addf %155, %222 : vector<16x32xf32>
    %c1_110 = arith.constant 1 : index
    %c0_111 = arith.constant 0 : index
    %c0_112 = arith.constant 0 : index
    %224 = vector.load %arg13[%c1_110, %c0_111, %c0_112] : memref<2x1x32xf32, #tpu.memory_space<vmem>>, vector<1x1x32xf32>
    %225 = vector.shape_cast %224 : vector<1x1x32xf32> to vector<1x32xf32>
    %c1_113 = arith.constant 1 : index
    %c0_114 = arith.constant 0 : index
    %c0_115 = arith.constant 0 : index
    %226 = vector.load %arg14[%c1_113, %c0_114, %c0_115] : memref<2x1x32xf32, #tpu.memory_space<vmem>>, vector<1x1x32xf32>
    %227 = vector.shape_cast %226 : vector<1x1x32xf32> to vector<1x32xf32>
    %cst_116 = arith.constant dense<0.000000e+00> : vector<16xf32>
    %228 = vector.multi_reduction <add>, %223, %cst_116 [1] : vector<16x32xf32> to vector<16xf32>
    %229 = vector.shape_cast %228 : vector<16xf32> to vector<16x1xf32>
    %cst_117 = arith.constant 3.200000e+01 : f32
    %230 = vector.broadcast %cst_117 : f32 to vector<16x1xf32>
    %231 = arith.divf %229, %230 : vector<16x1xf32>
    %232 = vector.broadcast %231 : vector<16x1xf32> to vector<16x32xf32>
    %233 = arith.subf %223, %232 : vector<16x32xf32>
    %234 = arith.mulf %233, %233 : vector<16x32xf32>
    %cst_118 = arith.constant dense<0.000000e+00> : vector<16xf32>
    %235 = vector.multi_reduction <add>, %234, %cst_118 [1] : vector<16x32xf32> to vector<16xf32>
    %236 = vector.shape_cast %235 : vector<16xf32> to vector<16x1xf32>
    %cst_119 = arith.constant 3.200000e+01 : f32
    %237 = vector.broadcast %cst_119 : f32 to vector<16x1xf32>
    %238 = arith.divf %236, %237 : vector<16x1xf32>
    %cst_120 = arith.constant 9.99999997E-7 : f32
    %239 = vector.broadcast %cst_120 : f32 to vector<16x1xf32>
    %240 = arith.addf %238, %239 : vector<16x1xf32>
    %241 = math.rsqrt %240 : vector<16x1xf32>
    %242 = vector.broadcast %241 : vector<16x1xf32> to vector<16x32xf32>
    %243 = arith.mulf %233, %242 : vector<16x32xf32>
    %244 = vector.broadcast %225 : vector<1x32xf32> to vector<16x32xf32>
    %245 = arith.mulf %243, %244 : vector<16x32xf32>
    %246 = vector.broadcast %227 : vector<1x32xf32> to vector<16x32xf32>
    %247 = arith.addf %245, %246 : vector<16x32xf32>
    %c1_121 = arith.constant 1 : index
    %c0_122 = arith.constant 0 : index
    %c0_123 = arith.constant 0 : index
    %248 = vector.load %arg15[%c1_121, %c0_122, %c0_123] : memref<2x32x128xbf16, #tpu.memory_space<vmem>>, vector<1x32x128xbf16>
    %249 = vector.shape_cast %248 : vector<1x32x128xbf16> to vector<32x128xbf16>
    %cst_124 = arith.constant dense<0.000000e+00> : vector<16x128xf32>
    %250 = tpu.matmul %247, %249, %cst_124 {dimension_numbers = #tpu.dot_dimension_numbers<[1], [0], [0], [1], [0, 0, 1, 1], [], []>} : vector<16x32xf32>, vector<32x128xbf16>, vector<16x128xf32> -> vector<16x128xf32>
    %c1_125 = arith.constant 1 : index
    %c0_126 = arith.constant 0 : index
    %c0_127 = arith.constant 0 : index
    %251 = vector.load %arg16[%c1_125, %c0_126, %c0_127] : memref<2x1x128xf32, #tpu.memory_space<vmem>>, vector<1x1x128xf32>
    %252 = vector.shape_cast %251 : vector<1x1x128xf32> to vector<1x128xf32>
    %253 = vector.broadcast %252 : vector<1x128xf32> to vector<16x128xf32>
    %254 = arith.addf %250, %253 : vector<16x128xf32>
    %cst_128 = arith.constant 5.000000e-01 : f32
    %255 = vector.broadcast %cst_128 : f32 to vector<16x128xf32>
    %256 = arith.mulf %255, %254 : vector<16x128xf32>
    %cst_129 = arith.constant 0.707106769 : f32
    %257 = vector.broadcast %cst_129 : f32 to vector<16x128xf32>
    %258 = arith.mulf %254, %257 : vector<16x128xf32>
    %cst_130 = arith.constant 0.000000e+00 : f32
    %259 = vector.broadcast %cst_130 : f32 to vector<16x128xf32>
    %260 = arith.cmpf oge, %258, %259 : vector<16x128xf32>
    %cst_131 = arith.constant 1.000000e+00 : f32
    %cst_132 = arith.constant -1.000000e+00 : f32
    %261 = vector.broadcast %cst_131 : f32 to vector<16x128xf32>
    %262 = vector.broadcast %cst_132 : f32 to vector<16x128xf32>
    %263 = arith.select %260, %261, %262 : vector<16x128xi1>, vector<16x128xf32>
    %264 = math.absf %258 : vector<16x128xf32>
    %cst_133 = arith.constant 0.327591091 : f32
    %265 = vector.broadcast %cst_133 : f32 to vector<16x128xf32>
    %266 = arith.mulf %265, %264 : vector<16x128xf32>
    %cst_134 = arith.constant 1.000000e+00 : f32
    %267 = vector.broadcast %cst_134 : f32 to vector<16x128xf32>
    %268 = arith.addf %267, %266 : vector<16x128xf32>
    %269 = tpu.reciprocal %268 : vector<16x128xf32> -> vector<16x128xf32>
    %cst_135 = arith.constant 1.06140542 : f32
    %270 = vector.broadcast %cst_135 : f32 to vector<16x128xf32>
    %271 = arith.mulf %269, %270 : vector<16x128xf32>
    %cst_136 = arith.constant -1.45315206 : f32
    %272 = vector.broadcast %cst_136 : f32 to vector<16x128xf32>
    %273 = arith.addf %272, %271 : vector<16x128xf32>
    %274 = arith.mulf %269, %273 : vector<16x128xf32>
    %cst_137 = arith.constant 1.42141378 : f32
    %275 = vector.broadcast %cst_137 : f32 to vector<16x128xf32>
    %276 = arith.addf %275, %274 : vector<16x128xf32>
    %277 = arith.mulf %269, %276 : vector<16x128xf32>
    %cst_138 = arith.constant -0.284496725 : f32
    %278 = vector.broadcast %cst_138 : f32 to vector<16x128xf32>
    %279 = arith.addf %278, %277 : vector<16x128xf32>
    %280 = arith.mulf %269, %279 : vector<16x128xf32>
    %cst_139 = arith.constant 0.254829586 : f32
    %281 = vector.broadcast %cst_139 : f32 to vector<16x128xf32>
    %282 = arith.addf %281, %280 : vector<16x128xf32>
    %283 = arith.mulf %269, %282 : vector<16x128xf32>
    %cst_140 = arith.constant 0.000000e+00 : f32
    %284 = vector.broadcast %cst_140 : f32 to vector<16x128xf32>
    %285 = arith.subf %284, %264 : vector<16x128xf32>
    %286 = arith.mulf %285, %264 : vector<16x128xf32>
    %287 = math.exp %286 : vector<16x128xf32>
    %288 = arith.mulf %283, %287 : vector<16x128xf32>
    %cst_141 = arith.constant 1.000000e+00 : f32
    %289 = vector.broadcast %cst_141 : f32 to vector<16x128xf32>
    %290 = arith.subf %289, %288 : vector<16x128xf32>
    %291 = arith.mulf %263, %290 : vector<16x128xf32>
    %cst_142 = arith.constant 1.000000e+00 : f32
    %292 = vector.broadcast %cst_142 : f32 to vector<16x128xf32>
    %293 = arith.addf %292, %291 : vector<16x128xf32>
    %294 = arith.mulf %256, %293 : vector<16x128xf32>
    %c1_143 = arith.constant 1 : index
    %c0_144 = arith.constant 0 : index
    %c0_145 = arith.constant 0 : index
    %295 = vector.load %arg17[%c1_143, %c0_144, %c0_145] : memref<2x128x32xbf16, #tpu.memory_space<vmem>>, vector<1x128x32xbf16>
    %296 = vector.shape_cast %295 : vector<1x128x32xbf16> to vector<128x32xbf16>
    %cst_146 = arith.constant dense<0.000000e+00> : vector<16x32xf32>
    %297 = tpu.matmul %294, %296, %cst_146 {dimension_numbers = #tpu.dot_dimension_numbers<[1], [0], [0], [1], [0, 0, 1, 1], [], []>} : vector<16x128xf32>, vector<128x32xbf16>, vector<16x32xf32> -> vector<16x32xf32>
    %c1_147 = arith.constant 1 : index
    %c0_148 = arith.constant 0 : index
    %c0_149 = arith.constant 0 : index
    %298 = vector.load %arg18[%c1_147, %c0_148, %c0_149] : memref<2x1x32xf32, #tpu.memory_space<vmem>>, vector<1x1x32xf32>
    %299 = vector.shape_cast %298 : vector<1x1x32xf32> to vector<1x32xf32>
    %300 = vector.broadcast %299 : vector<1x32xf32> to vector<16x32xf32>
    %301 = arith.addf %297, %300 : vector<16x32xf32>
    %302 = arith.addf %223, %301 : vector<16x32xf32>
    %c0_150 = arith.constant 0 : index
    %c0_151 = arith.constant 0 : index
    %303 = vector.load %arg19[%c0_150, %c0_151] : memref<1x32xf32, #tpu.memory_space<vmem>>, vector<1x32xf32>
    %c0_152 = arith.constant 0 : index
    %c0_153 = arith.constant 0 : index
    %304 = vector.load %arg20[%c0_152, %c0_153] : memref<1x32xf32, #tpu.memory_space<vmem>>, vector<1x32xf32>
    %cst_154 = arith.constant dense<0.000000e+00> : vector<16xf32>
    %305 = vector.multi_reduction <add>, %302, %cst_154 [1] : vector<16x32xf32> to vector<16xf32>
    %306 = vector.shape_cast %305 : vector<16xf32> to vector<16x1xf32>
    %cst_155 = arith.constant 3.200000e+01 : f32
    %307 = vector.broadcast %cst_155 : f32 to vector<16x1xf32>
    %308 = arith.divf %306, %307 : vector<16x1xf32>
    %309 = vector.broadcast %308 : vector<16x1xf32> to vector<16x32xf32>
    %310 = arith.subf %302, %309 : vector<16x32xf32>
    %311 = arith.mulf %310, %310 : vector<16x32xf32>
    %cst_156 = arith.constant dense<0.000000e+00> : vector<16xf32>
    %312 = vector.multi_reduction <add>, %311, %cst_156 [1] : vector<16x32xf32> to vector<16xf32>
    %313 = vector.shape_cast %312 : vector<16xf32> to vector<16x1xf32>
    %cst_157 = arith.constant 3.200000e+01 : f32
    %314 = vector.broadcast %cst_157 : f32 to vector<16x1xf32>
    %315 = arith.divf %313, %314 : vector<16x1xf32>
    %cst_158 = arith.constant 9.99999997E-7 : f32
    %316 = vector.broadcast %cst_158 : f32 to vector<16x1xf32>
    %317 = arith.addf %315, %316 : vector<16x1xf32>
    %318 = math.rsqrt %317 : vector<16x1xf32>
    %319 = vector.broadcast %318 : vector<16x1xf32> to vector<16x32xf32>
    %320 = arith.mulf %310, %319 : vector<16x32xf32>
    %321 = vector.broadcast %303 : vector<1x32xf32> to vector<16x32xf32>
    %322 = arith.mulf %320, %321 : vector<16x32xf32>
    %323 = vector.broadcast %304 : vector<1x32xf32> to vector<16x32xf32>
    %324 = arith.addf %322, %323 : vector<16x32xf32>
    %c0_159 = arith.constant 0 : index
    %c0_160 = arith.constant 0 : index
    %325 = vector.load %arg21[%c0_159, %c0_160] : memref<16x32xf32, #tpu.memory_space<vmem>>, vector<16x32xf32>
    tpu.vector_store %arg21[%c0_159, %c0_160], %324 {strides = array<i32>} : memref<16x32xf32, #tpu.memory_space<vmem>>, vector<16x32xf32>,
    return
  }
}

</mosaic_0001>

<bundles_post_ra>
// kernel: vit_maskrcnn_backbone_forward.2
= control target key start
LH: loop header
LB: loop body
LE: loop exit
PB: predicated region body
PF: predicated region fallthrough
CT: control target
= control target key end

     0   :  { %v110_v2 = vlaneseq  ;;  %v2906_v3 = vmov 0   ;;  %vm120_vm2 = vcmask 1046528   ;;  %vm304_vm3 = vcmask 523264   ;;  %s2907_s25 = smov 32   ;;  %s2909_s22 = smov 96   ;;  %s3595_s0 = inlined_call_operand.vmem [shape: f32[16,32], index: 0, kind: input, shape index: {}]   ;;  %s3596_s1 = inlined_call_operand.vmem [shape: f32[32,32], index: 1, kind: input, shape index: {}]   ;;  %s3597_s2 = inlined_call_operand.vmem [shape: f32[32,32], index: 2, kind: input, shape index: {}]   ;;  %s3598_s3 = inlined_call_operand.vmem [shape: f32[1,32], index: 3, kind: input, shape index: {}]   ;;  %s3599_s4 = inlined_call_operand.vmem [shape: bf16[192,32], index: 4, kind: input, shape index: {}]   ;;  %s3600_s5 = inlined_call_operand.vmem [shape: f32[2,1,32], index: 5, kind: input, shape index: {}]   ;;  %s3601_s6 = inlined_call_operand.vmem [shape: f32[2,1,32], index: 6, kind: input, shape index: {}]   ;;  %s3602_s7 = inlined_call_operand.vmem [shape: bf16[2,32,96], index: 7, kind: input, shape index: {}]   ;;  %s3603_s8 = inlined_call_operand.vmem [shape: f32[2,1,96], index: 8, kind: input, shape index: {}]   ;;  %s3604_s9 = inlined_call_operand.vmem [shape: bf16[2,32,32], index: 9, kind: input, shape index: {}]   ;;  %s3605_s10 = inlined_call_operand.vmem [shape: f32[2,1,32], index: 10, kind: input, shape index: {}]   ;;  %s3606_s11 = inlined_call_operand.vmem [shape: f32[2,1,32], index: 11, kind: input, shape index: {}]   ;;  %s3607_s12 = inlined_call_operand.vmem [shape: f32[2,1,32], index: 12, kind: input, shape index: {}]   ;;  %s3608_s13 = inlined_call_operand.vmem [shape: bf16[2,32,128], index: 13, kind: input, shape index: {}]   ;;  %s3609_s14 = inlined_call_operand.vmem [shape: f32[2,1,128], index: 14, kind: input, shape index: {}]   ;;  %s3610_s15 = inlined_call_operand.vmem [shape: bf16[2,128,32], index: 15, kind: input, shape index: {}]   ;;  %s3611_s16 = inlined_call_operand.vmem [shape: f32[2,1,32], index: 16, kind: input, shape index: {}]   ;;  %s3612_s17 = inlined_call_operand.vmem [shape: f32[1,32], index: 17, kind: input, shape index: {}]   ;;  %s3613_s18 = inlined_call_operand.vmem [shape: f32[1,32], index: 18, kind: input, shape index: {}]   ;;  %s3614_s19 = inlined_call_operand.vmem [shape: f32[2,4,192], index: 19, kind: input, shape index: {}]   ;;  %s3615_s20 = inlined_call_operand.<no memory space> [shape: f32[], index: 20, kind: input, shape index: {}]   ;;  %s3616_s21 = inlined_call_operand.vmem [shape: f32[16,32], index: 21, kind: output, shape index: {}]  }
   0x1   :  { %3622 = sst [smem:[#allocation8_spill]] %s3595_s0  ;;  %v3026_v0 = vstv %s3615_s20  ;;  %311 = vmatprep.subr.bf16.mxu0 %v2906_v3  ;;  %v2381_v11 = vld [vmem:[%s3614_s19 + $0x4] sm:$0xf]  ;;  %v2383_v22 = vld [vmem:[%s3614_s19 + $0xc] sm:$0xf]  ;;  %vm369_vm4 = vcmask 261120  }
   0x2   :  { %3623 = sst [smem:[#allocation9_spill]] %s3596_s1  ;;  %v111_v5 = vshrl.u32 %v110_v2, 7  ;;  %v140_v6 = vand.u32 127, %v110_v2  ;;  %v109_v23 = vld [vmem:[%s3614_s19] sm:$0xf]  ;;  %v2826_v57 = vld [vmem:[%s3602_s7 + $0x8] sm:$0xff]  }
   0x3   :  { %3624 = sst [smem:[#allocation10_spill]] %s3597_s2  ;;  %v2382_v28 = vld [vmem:[%s3614_s19 + $0x8] sm:$0xf]  ;;  %v2827_v58 = vld [vmem:[%s3602_s7] sm:$0xff]   ;;  %2617 = vmatprep.subr.bf16.mxu1 %v2826_v57  ;;  %vm2910_vm5 = vmmov 0   ;;  %s2911_s20 = smov 64  }
   0x4   :  { %3625 = sst [smem:[#allocation11_spill]] %s3598_s3  ;;  %v112_v8 = vadd.s32 8, %v111_v5  ;;  %v141_v9 = vadd.s32 128, %v140_v6  ;;  %2618 = vmatpush3.bf16.msra.mxu1 %v2826_v57 }
   0x5   :  { %3626 = sst [smem:[#allocation12_spill]] %s3599_s4  ;;  %2619 = vmatprep.subr.bf16.mxu1 %v2827_v58 }
   0x6   :  { %3627 = sst [smem:[#allocation13_spill]] %s3600_s5  ;;  %vm113_vm0 = vcmp.lt.s32.totalorder %v112_v8, 12  ;;  %vm142_vm1 = vcmp.lt.s32.totalorder %v141_v9, 192  ;;  %v2399_v8 = vld [vmem:[%s3601_s6] ss:$0 sm:$0xff] }
   0x7   :  { %s3628_s3 = sld [smem:[#allocation12_spill]]  ;;  %v138_v13 = vsel %vm113_vm0, %v2381_v11, %v3026_v0  ;;  %v188_v24 = vsel %vm113_vm0, %v2383_v22, %v3026_v0  ;;  %v114_v26 = vsel %vm113_vm0, %v109_v23, %v3026_v0  ;;  %v163_v32 = vsel %vm113_vm0, %v2382_v28, %v3026_v0 }
   0x8   :  { %v143_v14 = vsel %vm142_vm1, %v138_v13, %v3026_v0  ;;  %v193_v27 = vsel %vm142_vm1, %v188_v24, %v3026_v0  ;;  %v121_v30 = vsel %vm120_vm2, %v114_v26, %v3026_v0  ;;  %v170_v35 = vsel %vm120_vm2, %v163_v32, %v3026_v0  ;;  %s3629_s28 = sld [smem:[#allocation8_spill]]  ;;  %2620 = vmatpush3.bf16.msra.mxu1 %v2827_v58 }
   0x9   :  { %v145_v15 = vsel %vm120_vm2, %v143_v14, %v3026_v0  ;;  %v195_v31 = vsel %vm120_vm2, %v193_v27, %v3026_v0  ;;  %v122_v33 = vrot.slane %v121_v30, 7  ;;  %v171_v36 = vrot.slane %v170_v35, 7  ;;  %s3630_s1 = sld [smem:[#allocation9_spill]] }
   0xa   :  { %v146_v17 = vrot.slane %v145_v15, 7  ;;  %v196_v34 = vrot.slane %v195_v31, 7  ;;  %s3631_s0 = sld [smem:[#allocation13_spill]]  ;;  %v2908_v15 = vmov 0.0  }
   0xb   :  { %2624 = vmatprep.subr.mxu1 %v2908_v15  ;;  %s3632_s24 = sld [smem:[#allocation10_spill]] }
   0xc   :  { %2396 = vmatprep.mubr.msk.f32.mxu0 %vm304_vm3, %v146_v17  ;;  %s3633_s4 = sld [smem:[#allocation11_spill]] }
   0xd   :  { %v2814_v1 = vld [vmem:[%s3628_s3 + $0x38] sm:$0xff]   ;;  %v2815_v4 = vld [vmem:[%s3628_s3 + $0x30] sm:$0xff]   ;;  %v2816_v7 = vld [vmem:[%s3628_s3 + $0x28] sm:$0xff]  }
   0xe   :  { %312 = vmatpush1.bf16.msra.mxu0 %v2814_v1  ;;  %v2817_v10 = vld [vmem:[%s3628_s3 + $0x20] sm:$0xff]   ;;  %v2818_v12 = vld [vmem:[%s3628_s3 + $0x18] sm:$0xff]   ;;  %v2819_v16 = vld [vmem:[%s3628_s3 + $0x10] sm:$0xff]  }
   0xf   :  { %313 = vmatprep.subr.bf16.mxu0 %v2906_v3  ;;  %v2820_v18 = vld [vmem:[%s3628_s3 + $0x8] sm:$0xff]   ;;  %v2821_v19 = vld [vmem:[%s3628_s3] sm:$0xff]   ;;  %v2822_v20 = vld [vmem:[%s3628_s3 + $0x58] sm:$0xff]  }
  0x10   :  { %v2823_v21 = vld [vmem:[%s3628_s3 + $0x50] sm:$0xff]   ;;  %v2824_v25 = vld [vmem:[%s3628_s3 + $0x48] sm:$0xff]   ;;  %v2825_v29 = vld [vmem:[%s3628_s3 + $0x40] sm:$0xff]  }
  0x11   :  { %v230_v37 = vld [vmem:[%s3629_s28] sm:$0xff]  ;;  %v231_v41 = vld [vmem:[%s3629_s28 + $0x8] sm:$0xff]  ;;  %v356_v59 = vld [vmem:[%s3630_s1 + $0x10] sm:$0xff] }
  0x12   :  { %314 = vmatpush1.bf16.msra.mxu0 %v2815_v4  ;;  %v357_v60 = vld [vmem:[%s3630_s1 + $0x18] sm:$0xff]  ;;  %v355_v61 = vld [vmem:[%s3630_s1 + $0x8] sm:$0xff]  ;;  %v354_v62 = vld [vmem:[%s3630_s1] sm:$0xff] }
  0x13   :  { %315 = vmatprep.subr.bf16.mxu0 %v2906_v3  ;;  %v2398_v6 = vld [vmem:[%s3631_s0] ss:$0 sm:$0xff] }
  0x16   :  { %316 = vmatpush1.bf16.msra.mxu0 %v2816_v7 }
  0x17   :  { %317 = vmatprep.subr.bf16.mxu0 %v2906_v3 }
  0x1a   :  { %318 = vmatpush1.bf16.msra.mxu0 %v2817_v10 }
  0x1b   :  { %319 = vmatprep.subr.bf16.mxu0 %v2906_v3 }
  0x1e   :  { %320 = vmatpush1.bf16.msra.mxu0 %v2818_v12 }
  0x1f   :  { %321 = vmatprep.subr.bf16.mxu0 %v2906_v3 }
  0x22   :  { %322 = vmatpush1.bf16.msra.mxu0 %v2819_v16 }
  0x23   :  { %323 = vmatprep.subr.bf16.mxu0 %v2906_v3 }
  0x26   :  { %324 = vmatpush1.bf16.msra.mxu0 %v2820_v18 }
  0x27   :  { %325 = vmatprep.subr.bf16.mxu0 %v2906_v3 }
  0x2a   :  { %326 = vmatpush1.bf16.msra.mxu0 %v2821_v19  ;;  %v2400_v19 = vld [vmem:[%s3603_s8] ss:$0 sm:$0xff] }
  0x2b   :  { %335 = vmatprep.subr.bf16.mxu0 %v2906_v3 }
  0x2e   :  { %336 = vmatpush2.bf16.msra.mxu0 %v2822_v20 }
  0x2f   :  { %337 = vmatprep.subr.bf16.mxu0 %v2906_v3 }
  0x32   :  { %338 = vmatpush2.bf16.msra.mxu0 %v2823_v21 }
  0x33   :  { %339 = vmatprep.subr.bf16.mxu0 %v2906_v3 }
  0x36   :  { %340 = vmatpush2.bf16.msra.mxu0 %v2824_v25 }
  0x37   :  { %341 = vmatprep.subr.bf16.mxu0 %v2906_v3 }
  0x3a   :  { %342 = vmatpush2.bf16.msra.mxu0 %v2825_v29 }
  0x3d   :  { %344 = vmatmul.mubr.f32.vlgmr.msra.gmra.mxu0 %v122_v33 }
  0x3e   :  { %2397 = vmatprep.mubr.msk.f32.mxu0 %vm304_vm3, %v196_v34 }
  0x41   :  { %349 = vmatmul.mubr.f32.gmra.mxu0 %v171_v36 }
  0xfd   :  { %v345_v38 = vpop.f32.mrf.mxu0 }
  0xfe   :  { %v3101_v39 = vadd.f32 %v345_v38, %v230_v37 }
  0xff   :  { %v347_v40 = vpop.f32.mrf.mxu0 }
 0x100   :  { %v370_v42 = vsel %vm369_vm4, %v3101_v39, 0.0 }
 0x101   :  { %v350_v43 = vpop.f32.mrf.mxu0  ;;  %371 = vadd.xlane.f32.xlu0 %v370_v42  ;;  %v3208_v42 = vld [vmem:[%s3632_s24 + $0x18] sm:$0xff] }
 0x102   :  { %v3108_v44 = vadd.f32 %v350_v43, %v231_v41  ;;  %v3215_v43 = vld [vmem:[%s3632_s24 + $0x10] sm:$0xff] }
 0x103   :  { %v352_v45 = vpop.f32.mrf.mxu0 }
 0x104   :  { %v373_v46 = vsel %vm369_vm4, %v3108_v44, 0.0  ;;  %v3221_v45 = vld [vmem:[%s3632_s24 + $0x8] sm:$0xff] }
 0x105   :  { %374 = vadd.xlane.f32.xlu0 %v373_v46  ;;  %v3229_v46 = vld [vmem:[%s3632_s24] sm:$0xff] }
 0x11b   :  { %495 = vrot.lane.b32.xlu0 %v357_v60, %s2907_s25 }
 0x18a   :  { %v372_v47 = vpop.xlane.xlu0 %371 }
 0x18b   :  { %v377_v48 = vmul.f32 0.03125, %v372_v47  ;;  %v3237_v47 = vld [vmem:[%s3633_s4] ss:$0 sm:$0xff] }
 0x18d   :  { %v379_v49 = vsub.f32 %v3101_v39, %v377_v48 }
 0x18e   :  { %v375_v50 = vpop.xlane.xlu0 %374 }
 0x18f   :  { %v378_v51 = vmul.f32 0.03125, %v375_v50  ;;  %v381_v52 = vmul.f32 %v379_v49, %v379_v49 }
 0x191   :  { %v380_v53 = vsub.f32 %v3108_v44, %v378_v51  ;;  %v383_v54 = vsel %vm369_vm4, %v381_v52, 0.0 }
 0x192   :  { %384 = vadd.xlane.f32.xlu1 %v383_v54  ;;  %v3152_v22 = vpop.permute.xlu0 %495 }
 0x193   :  { %v382_v55 = vmul.f32 %v380_v53, %v380_v53 }
 0x195   :  { %v386_v56 = vsel %vm369_vm4, %v382_v55, 0.0 }
 0x196   :  { %387 = vadd.xlane.f32.xlu1 %v386_v56 }
 0x1a7   :  { %493 = vrot.lane.b32.xlu1 %v356_v59, %s2907_s25 }
 0x1ab   :  { %491 = vrot.lane.b32.xlu1 %v355_v61, %s2907_s25 }
 0x1af   :  { %489 = vrot.lane.b32.xlu1 %v354_v62, %s2907_s25 }
 0x21b   :  { %v385_v63 = vpop.xlane.xlu1 %384 }
 0x21c   :  { %v389_v0 = vmul.f32 0.03125, %v385_v63 }
 0x21e   :  { %v391_v1 = vadd.f32 1e-06, %v389_v0 }
 0x21f   :  { %v388_v2 = vpop.xlane.xlu1 %387 }
 0x220   :  { %2854 = vrsqrt.f32 %v391_v1  ;;  %v390_v3 = vmul.f32 0.03125, %v388_v2 }
 0x222   :  { %v392_v4 = vadd.f32 1e-06, %v390_v3 }
 0x223   :  { %v3143_v16 = vpop.permute.xlu1 %493 }
 0x224   :  { %2856 = vrsqrt.f32 %v392_v4 }
 0x227   :  { %v3145_v18 = vpop.permute.xlu1 %491 }
 0x22b   :  { %v3160_v25 = vpop.permute.xlu1 %489 }
 0x22d   :  { %v2855_v5 = vpop.eup %2854 }
 0x22e   :  { %v395_v7 = vmul.f32 %v2855_v5, %v379_v49 }
 0x230   :  { %v403_v9 = vmul.f32 %v2398_v6, %v395_v7 }
 0x231   :  { %v2857_v10 = vpop.eup %2856 }
 0x232   :  { %v396_v11 = vmul.f32 %v2857_v10, %v380_v53  ;;  %v411_v12 = vadd.f32 %v2399_v8, %v403_v9 }
 0x234   :  { %v404_v13 = vmul.f32 %v2398_v6, %v396_v11  ;;  %2621 = vmatprep.mubr.msk.f32.mxu1 %vm369_vm4, %v411_v12 }
 0x236   :  { %v412_v14 = vadd.f32 %v2399_v8, %v404_v13 }
 0x238   :  { %2622 = vmatmul.mubr.msk.f32.vlgmr.msra.gmra.mxu1 %vm369_vm4, %v412_v14 }
 0x239   :  { %2632 = vmatprep.mubr.msk.f32.mxu1 %vm2910_vm5, %v2908_v15 }
 0x2f8   :  { %v2623_v17 = vpop.f32.mrf.mxu1 }
 0x2f9   :  { %v3164_v26 = vadd.f32 %v2623_v17, %v2400_v19 }
 0x2fa   :  { %v476_v20 = vpop.f32.mrf.mxu1 }
 0x2fb   :  { %v3150_v21 = vadd.f32 %v2400_v19, %v476_v20  ;;  %v507_v29 = vmul.f32 %v3143_v16, %v3164_v26  ;;  %v508_v30 = vmul.f32 %v3152_v22, %v3164_v26  ;;  %v505_v31 = vmul.f32 %v3160_v25, %v3164_v26 }
 0x2fc   :  { %v506_v32 = vmul.f32 %v3145_v18, %v3164_v26 }
 0x2fd   :  { %v503_v23 = vmul.f32 %v3143_v16, %v3150_v21  ;;  %v504_v24 = vmul.f32 %v3152_v22, %v3150_v21  ;;  %v501_v27 = vmul.f32 %v3160_v25, %v3150_v21  ;;  %v502_v28 = vmul.f32 %v3145_v18, %v3150_v21 }
 0x2ff   :  { %541 = vrot.lane.b32.xlu1 %v503_v23, %s2909_s22  ;;  %543 = vrot.lane.b32.xlu0 %v504_v24, %s2909_s22 }
 0x303   :  { %537 = vrot.lane.b32.xlu1 %v501_v27, %s2909_s22  ;;  %539 = vrot.lane.b32.xlu0 %v502_v28, %s2909_s22 }
 0x307   :  { %634 = vrot.lane.b32.xlu1 %v507_v29, %s2909_s22  ;;  %636 = vrot.lane.b32.xlu0 %v508_v30, %s2909_s22 }
 0x30b   :  { %630 = vrot.lane.b32.xlu1 %v505_v31, %s2909_s22  ;;  %632 = vrot.lane.b32.xlu0 %v506_v32, %s2909_s22  ;;  %v2828_v31 = vld [vmem:[%s3604_s9 + $0x8] sm:$0xff]   ;;  %v2829_v32 = vld [vmem:[%s3604_s9] sm:$0xff]  }
 0x371   :  { %v544_v33 = vpop.permute.xlu0 %543  ;;  %v542_v34 = vpop.permute.xlu1 %541 }
 0x372   :  { %2625 = vmatpush3.xpose.msk.msra.mxu1 %vm369_vm4, %v544_v33 }
 0x373   :  { %2626 = vmatprep.subr.mxu1 %v2908_v15 }
 0x375   :  { %v540_v35 = vpop.permute.xlu0 %539  ;;  %v538_v36 = vpop.permute.xlu1 %537 }
 0x376   :  { %2627 = vmatpush3.xpose.msk.msra.mxu1 %vm369_vm4, %v542_v34 }
 0x377   :  { %2628 = vmatprep.subr.mxu1 %v2908_v15 }
 0x379   :  { %v637_v37 = vpop.permute.xlu0 %636  ;;  %v635_v38 = vpop.permute.xlu1 %634 }
 0x37a   :  { %2629 = vmatpush3.xpose.msk.msra.mxu1 %vm369_vm4, %v540_v35 }
 0x37b   :  { %2630 = vmatprep.subr.mxu1 %v2908_v15 }
 0x37d   :  { %v633_v40 = vpop.permute.xlu0 %632  ;;  %v631_v41 = vpop.permute.xlu1 %630 }
 0x37e   :  { %2631 = vmatpush3.xpose.msk.msra.mxu1 %vm369_vm4, %v538_v36 }
 0x37f   :  { %2635 = vmatprep.subr.mxu1 %v2908_v15 }
 0x381   :  { %2633 = vmatmul.mubr.msk.f32.vlgmr.msra.gmra.mxu1 %vm369_vm4, %v3150_v21 }
 0x382   :  { %2636 = vmatpush3.xpose.msk.msra.mxu1 %vm369_vm4, %v637_v37  ;;  %2643 = vmatprep.mubr.msk.f32.mxu1 %vm2910_vm5, %v2908_v15  ;;  %v2420_v37 = vld [vmem:[%s3605_s10] ss:$0 sm:$0xff] }
 0x383   :  { %2637 = vmatprep.subr.mxu1 %v2908_v15 }
 0x386   :  { %2638 = vmatpush3.xpose.msk.msra.mxu1 %vm369_vm4, %v635_v38 }
 0x387   :  { %2639 = vmatprep.subr.mxu1 %v2908_v15 }
 0x38a   :  { %2640 = vmatpush3.xpose.msk.msra.mxu1 %vm369_vm4, %v633_v40 }
 0x38b   :  { %2641 = vmatprep.subr.mxu1 %v2908_v15 }
 0x38e   :  { %2642 = vmatpush3.xpose.msk.msra.mxu1 %vm369_vm4, %v631_v41 }
 0x38f   :  { %2646 = vmatprep.subr.mxu1 %v3208_v42 }
 0x391   :  { %2644 = vmatmul.mubr.msk.f32.vlgmr.msra.gmra.mxu1 %vm369_vm4, %v3164_v26 }
 0x392   :  { %2647 = vmatpush3.msra.mxu1 %v3208_v42 }
 0x393   :  { %2648 = vmatprep.subr.mxu1 %v3215_v43 }
 0x394   :  { %2649 = vmatpush3.msra.mxu1 %v3215_v43 }
 0x395   :  { %2650 = vmatprep.subr.mxu1 %v3221_v45 }
 0x396   :  { %2651 = vmatpush3.msra.mxu1 %v3221_v45 }
 0x397   :  { %2652 = vmatprep.subr.mxu1 %v3229_v46 }
 0x398   :  { %2653 = vmatpush3.msra.mxu1 %v3229_v46 }
 0x399   :  { %2657 = vmatprep.subr.mxu1 %v2908_v15 }
 0x441   :  { %v622_v48 = vpop.f32.mrf.mxu1 }
 0x442   :  { %v725_v49 = vadd.f32 %v3237_v47, %v622_v48 }
 0x443   :  { %v2634_v50 = vpop.f32.mrf.mxu1 }
 0x444   :  { %v727_v51 = vsel %vm369_vm4, %v725_v49, -inf }
 0x445   :  { %728 = vmax.xlane.f32.xlu0 %v727_v51 }
 0x451   :  { %v715_v52 = vpop.f32.mrf.mxu1 }
 0x452   :  { %v726_v53 = vadd.f32 %v3237_v47, %v715_v52 }
 0x453   :  { %v2645_v54 = vpop.f32.mrf.mxu1 }
 0x454   :  { %v730_v55 = vsel %vm369_vm4, %v726_v53, -inf }
 0x455   :  { %731 = vmax.xlane.f32.xlu1 %v730_v55 }
 0x45b   :  { %519 = vrot.lane.b32.xlu0 %v3208_v42, %s2911_s20 }
 0x45f   :  { %515 = vrot.lane.b32.xlu0 %v3221_v45, %s2911_s20 }
 0x466   :  { %517 = vrot.lane.b32.xlu1 %v3215_v43, %s2911_s20 }
 0x46a   :  { %513 = vrot.lane.b32.xlu1 %v3229_v46, %s2911_s20 }
 0x4ce   :  { %v729_v56 = vpop.xlane.xlu0 %728 }
 0x4cf   :  { %v733_v57 = vsub.f32 %v725_v49, %v729_v56 }
 0x4d1   :  { %v735_v58 = vmul.f32 1.442695, %v733_v57 }
 0x4d2   :  { %v3251_v59 = vpop.permute.xlu0 %519 }
 0x4d3   :  { %2858 = vpow2.f32 %v735_v58  ;;  %v528_v60 = vmul.f32 %v3251_v59, %v3150_v21  ;;  %v532_v63 = vmul.f32 %v3251_v59, %v3164_v26 }
 0x4d5   :  { %834 = vrot.lane.b32.xlu0 %v528_v60, %s2911_s20 }
 0x4d6   :  { %v3256_v61 = vpop.permute.xlu0 %515 }
 0x4d7   :  { %v526_v62 = vmul.f32 %v3256_v61, %v3150_v21  ;;  %v530_v2 = vmul.f32 %v3256_v61, %v3164_v26 }
 0x4d9   :  { %830 = vrot.lane.b32.xlu0 %v526_v62, %s2911_s20 }
 0x4dd   :  { %923 = vrot.lane.b32.xlu0 %v532_v63, %s2911_s20  ;;  %v2830_v63 = vld [vmem:[%s3608_s13 + $0x8] sm:$0xff]  }
 0x4de   :  { %v732_v0 = vpop.xlane.xlu1 %731 }
 0x4df   :  { %v734_v1 = vsub.f32 %v726_v53, %v732_v0  ;;  %v2831_v0 = vld [vmem:[%s3608_s13] sm:$0xff]  }
 0x4e0   :  { %v2859_v3 = vpop.eup %2858 }
 0x4e1   :  { %v737_v4 = vmul.f32 1.442695, %v734_v1  ;;  %2654 = vmatprep.mubr.msk.f32.mxu1 %vm369_vm4, %v2859_v3  ;;  %919 = vrot.lane.b32.xlu0 %v530_v2, %s2911_s20 }
 0x4e2   :  { %v3268_v5 = vpop.permute.xlu1 %517 }
 0x4e3   :  { %2860 = vpow2.f32 %v737_v4  ;;  %v527_v6 = vmul.f32 %v3268_v5, %v3150_v21  ;;  %v531_v9 = vmul.f32 %v3268_v5, %v3164_v26 }
 0x4e5   :  { %832 = vrot.lane.b32.xlu1 %v527_v6, %s2911_s20 }
 0x4e6   :  { %v3273_v7 = vpop.permute.xlu1 %513 }
 0x4e7   :  { %v525_v8 = vmul.f32 %v3273_v7, %v3150_v21  ;;  %v529_v10 = vmul.f32 %v3273_v7, %v3164_v26 }
 0x4e9   :  { %828 = vrot.lane.b32.xlu1 %v525_v8, %s2911_s20 }
 0x4ed   :  { %921 = vrot.lane.b32.xlu1 %v531_v9, %s2911_s20 }
 0x4f0   :  { %v2861_v11 = vpop.eup %2860 }
 0x4f1   :  { %917 = vrot.lane.b32.xlu1 %v529_v10, %s2911_s20  ;;  %2655 = vmatmul.mubr.msk.f32.vlgmr.msra.gmra.mxu1 %vm369_vm4, %v2861_v11  ;;  %v2425_v10 = vld [vmem:[%s3606_s11] ss:$0 sm:$0xff] }
 0x4f2   :  { %2665 = vmatprep.mubr.msk.f32.mxu1 %vm2910_vm5, %v2908_v15 }
 0x547   :  { %v835_v12 = vpop.permute.xlu0 %834 }
 0x548   :  { %2658 = vmatpush3.msra.mxu1 %v835_v12  ;;  %v2426_v12 = vld [vmem:[%s3607_s12] ss:$0 sm:$0xff] }
 0x549   :  { %2659 = vmatprep.subr.mxu1 %v2908_v15 }
 0x54b   :  { %v831_v14 = vpop.permute.xlu0 %830 }
 0x54f   :  { %v924_v23 = vpop.permute.xlu0 %923 }
 0x553   :  { %v920_v28 = vpop.permute.xlu0 %919 }
 0x557   :  { %v833_v13 = vpop.permute.xlu1 %832 }
 0x558   :  { %2660 = vmatpush3.msra.mxu1 %v833_v13 }
 0x559   :  { %2661 = vmatprep.subr.mxu1 %v2908_v15 }
 0x55a   :  { %2662 = vmatpush3.msra.mxu1 %v831_v14 }
 0x55b   :  { %v829_v17 = vpop.permute.xlu1 %828  ;;  %2663 = vmatprep.subr.mxu1 %v2908_v15 }
 0x55c   :  { %2664 = vmatpush3.msra.mxu1 %v829_v17 }
 0x55d   :  { %2668 = vmatprep.subr.mxu1 %v2908_v15 }
 0x55f   :  { %v922_v26 = vpop.permute.xlu1 %921 }
 0x563   :  { %v918_v29 = vpop.permute.xlu1 %917 }
 0x5b1   :  { %v2656_v19 = vpop.f32.mrf.mxu1 }
 0x5b3   :  { %v811_v20 = vpop.f32.mrf.mxu1 }
 0x5b4   :  { %2862 = vrcp.f32 %v811_v20 }
 0x5b5   :  { %2864 = vrcp.f32 %v2656_v19 }
 0x5c1   :  { %v2863_v21 = vpop.eup %2862 }
 0x5c2   :  { %v822_v24 = vmul.f32 %v2863_v21, %v2859_v3  ;;  %v2865_v27 = vpop.eup %2864 }
 0x5c3   :  { %v823_v30 = vmul.f32 %v2865_v27, %v2861_v11  ;;  %v2835_v27 = vld [vmem:[%s3610_s15 + $0x20] sm:$0xff]  }
 0x5c4   :  { %2666 = vmatmul.mubr.msk.f32.vlgmr.msra.gmra.mxu1 %vm369_vm4, %v822_v24  ;;  %v2833_v24 = vld [vmem:[%s3610_s15 + $0x30] sm:$0xff]  }
 0x5c5   :  { %2669 = vmatpush3.msra.mxu1 %v924_v23  ;;  %2676 = vmatprep.mubr.msk.f32.mxu1 %vm2910_vm5, %v2908_v15  ;;  %v2832_v23 = vld [vmem:[%s3610_s15 + $0x38] sm:$0xff]  }
 0x5c6   :  { %2670 = vmatprep.subr.mxu1 %v2908_v15  ;;  %2693 = vmatprep.subr.bf16.mxu0 %v2832_v23 }
 0x5c7   :  { %2671 = vmatpush3.msra.mxu1 %v922_v26  ;;  %2694 = vmatpush3.bf16.msra.mxu0 %v2832_v23  ;;  %v2834_v26 = vld [vmem:[%s3610_s15 + $0x28] sm:$0xff]  }
 0x5c8   :  { %2672 = vmatprep.subr.mxu1 %v2908_v15  ;;  %2695 = vmatprep.subr.bf16.mxu0 %v2833_v24 }
 0x5c9   :  { %2673 = vmatpush3.msra.mxu1 %v920_v28  ;;  %v2836_v28 = vld [vmem:[%s3610_s15 + $0x18] sm:$0xff]  }
 0x5ca   :  { %2674 = vmatprep.subr.mxu1 %v2908_v15 }
 0x5cb   :  { %2675 = vmatpush3.msra.mxu1 %v918_v29  ;;  %2696 = vmatpush3.bf16.msra.mxu0 %v2833_v24  ;;  %v2837_v29 = vld [vmem:[%s3610_s15 + $0x10] sm:$0xff]  }
 0x5cc   :  { %2677 = vmatmul.mubr.msk.f32.vlgmr.msra.gmra.mxu1 %vm369_vm4, %v823_v30  ;;  %2679 = vmatprep.subr.bf16.mxu1 %v2828_v31  ;;  %v2838_v30 = vld [vmem:[%s3610_s15 + $0x8] sm:$0xff]  }
 0x5cd   :  { %2680 = vmatpush3.bf16.msra.mxu1 %v2828_v31  ;;  %2697 = vmatprep.subr.bf16.mxu0 %v2834_v26  ;;  %v2839_v31 = vld [vmem:[%s3610_s15] sm:$0xff]  }
 0x5ce   :  { %2681 = vmatprep.subr.bf16.mxu1 %v2829_v32 }
 0x5cf   :  { %2698 = vmatpush3.bf16.msra.mxu0 %v2834_v26 }
 0x5d0   :  { %2699 = vmatprep.subr.bf16.mxu0 %v2835_v27 }
 0x5d1   :  { %2682 = vmatpush3.bf16.msra.mxu1 %v2829_v32  ;;  %v2427_v32 = vld [vmem:[%s3609_s14] ss:$0 sm:$0xff] }
 0x5d2   :  { %2686 = vmatprep.subr.bf16.mxu1 %v2830_v63 }
 0x5d3   :  { %2700 = vmatpush3.bf16.msra.mxu0 %v2835_v27  ;;  %v2912_v27 = vmov -1.0  }
 0x5d4   :  { %2701 = vmatprep.subr.bf16.mxu0 %v2836_v28 }
 0x5d7   :  { %2702 = vmatpush3.bf16.msra.mxu0 %v2836_v28 }
 0x5d8   :  { %2703 = vmatprep.subr.bf16.mxu0 %v2837_v29 }
 0x5db   :  { %2704 = vmatpush3.bf16.msra.mxu0 %v2837_v29 }
 0x5dc   :  { %2705 = vmatprep.subr.bf16.mxu0 %v2838_v30 }
 0x5df   :  { %2706 = vmatpush3.bf16.msra.mxu0 %v2838_v30 }
 0x5e0   :  { %2707 = vmatprep.subr.bf16.mxu0 %v2839_v31 }
 0x5e3   :  { %2708 = vmatpush3.bf16.msra.mxu0 %v2839_v31 }
 0x5e4   :  { %2741 = vmatprep.subr.mxu0 %v3208_v42 }
 0x684   :  { %v909_v33 = vpop.f32.mrf.mxu1 }
 0x685   :  { %2683 = vmatprep.mubr.msk.f32.mxu1 %vm369_vm4, %v909_v33 }
 0x686   :  { %v2667_v34 = vpop.f32.mrf.mxu1 }
 0x68c   :  { %v998_v35 = vpop.f32.mrf.mxu1 }
 0x68d   :  { %2684 = vmatmul.mubr.msk.f32.vlgmr.msra.gmra.mxu1 %vm369_vm4, %v998_v35 }
 0x68e   :  { %v2678_v36 = vpop.f32.mrf.mxu1  ;;  %2687 = vmatpush3.bf16.msra.mxu1 %v2830_v63 }
 0x68f   :  { %2688 = vmatprep.subr.bf16.mxu1 %v2831_v0 }
 0x692   :  { %2689 = vmatpush3.bf16.msra.mxu1 %v2831_v0 }
 0x74d   :  { %v2685_v38 = vpop.f32.mrf.mxu1 }
 0x74e   :  { %v1071_v40 = vadd.f32 %v2685_v38, %v2420_v37 }
 0x74f   :  { %v1065_v41 = vpop.f32.mrf.mxu1 }
 0x750   :  { %v3310_v48 = vadd.f32 %v1071_v40, %v3108_v44  ;;  %v1066_v49 = vadd.f32 %v2420_v37, %v1065_v41 }
 0x752   :  { %v3313_v50 = vadd.f32 %v1066_v49, %v3101_v39  ;;  %v1081_v51 = vsel %vm369_vm4, %v3310_v48, 0.0 }
 0x753   :  { %1082 = vadd.xlane.f32.xlu1 %v1081_v51 }
 0x754   :  { %v1078_v52 = vsel %vm369_vm4, %v3313_v50, 0.0 }
 0x755   :  { %1079 = vadd.xlane.f32.xlu0 %v1078_v52 }
 0x7dc   :  { %v1083_v53 = vpop.xlane.xlu1 %1082 }
 0x7dd   :  { %v1085_v54 = vmul.f32 0.03125, %v1083_v53 }
 0x7de   :  { %v1080_v55 = vpop.xlane.xlu0 %1079 }
 0x7df   :  { %v1084_v56 = vmul.f32 0.03125, %v1080_v55  ;;  %v1087_v57 = vsub.f32 %v3310_v48, %v1085_v54 }
 0x7e1   :  { %v1086_v44 = vsub.f32 %v3313_v50, %v1084_v56  ;;  %v1089_v60 = vmul.f32 %v1087_v57, %v1087_v57 }
 0x7e3   :  { %v1088_v58 = vmul.f32 %v1086_v44, %v1086_v44  ;;  %v1093_v62 = vsel %vm369_vm4, %v1089_v60, 0.0 }
 0x7e5   :  { %v1090_v39 = vsel %vm369_vm4, %v1088_v58, 0.0 }
 0x7e6   :  { %1091 = vadd.xlane.f32.xlu0 %v1090_v39 }
 0x7ea   :  { %1094 = vadd.xlane.f32.xlu0 %v1093_v62 }
 0x86f   :  { %v1092_v1 = vpop.xlane.xlu0 %1091 }
 0x870   :  { %v1096_v2 = vmul.f32 0.03125, %v1092_v1 }
 0x872   :  { %v1098_v3 = vadd.f32 1e-06, %v1096_v2 }
 0x873   :  { %v1095_v4 = vpop.xlane.xlu0 %1094 }
 0x874   :  { %2866 = vrsqrt.f32 %v1098_v3  ;;  %v1097_v6 = vmul.f32 0.03125, %v1095_v4 }
 0x876   :  { %v1099_v8 = vadd.f32 1e-06, %v1097_v6 }
 0x878   :  { %2868 = vrsqrt.f32 %v1099_v8 }
 0x881   :  { %v2867_v9 = vpop.eup %2866 }
 0x882   :  { %v1102_v11 = vmul.f32 %v2867_v9, %v1086_v44 }
 0x884   :  { %v1110_v13 = vmul.f32 %v2425_v10, %v1102_v11 }
 0x885   :  { %v2869_v14 = vpop.eup %2868 }
 0x886   :  { %v1103_v17 = vmul.f32 %v2869_v14, %v1087_v57  ;;  %v1118_v19 = vadd.f32 %v2426_v12, %v1110_v13 }
 0x888   :  { %v1111_v20 = vmul.f32 %v2425_v10, %v1103_v17  ;;  %2690 = vmatprep.mubr.msk.f32.mxu1 %vm369_vm4, %v1118_v19 }
 0x88a   :  { %v1119_v21 = vadd.f32 %v2426_v12, %v1111_v20 }
 0x88c   :  { %2691 = vmatmul.mubr.msk.f32.vlgmr.msra.gmra.mxu1 %vm369_vm4, %v1119_v21 }
 0x94c   :  { %v2692_v33 = vpop.f32.mrf.mxu1 }
 0x94d   :  { %v1189_v34 = vadd.f32 %v2692_v33, %v2427_v32 }
 0x94e   :  { %v1183_v35 = vpop.f32.mrf.mxu1 }
 0x94f   :  { %v1195_v36 = vmul.f32 0.70710677, %v1189_v34  ;;  %v1184_v37 = vadd.f32 %v2427_v32, %v1183_v35 }
 0x951   :  { %v1201_v38 = vand.u32 2147483647, %v1195_v36  ;;  %v1194_v40 = vmul.f32 0.70710677, %v1184_v37  ;;  %vm1197_vm6 = vcmp.ge.f32.partialorder %v1195_v36, 0.0 }
 0x952   :  { %v1199_v28 = vsel %vm1197_vm6, 1.0, %v2912_v27 }
 0x953   :  { %v1203_v41 = vmul.f32 0.3275911, %v1201_v38  ;;  %v1200_v49 = vand.u32 2147483647, %v1194_v40  ;;  %v1227_v54 = vsub.f32 0.0, %v1201_v38  ;;  %vm1196_vm7 = vcmp.ge.f32.partialorder %v1194_v40, 0.0 }
 0x954   :  { %v1198_v32 = vsel %vm1196_vm7, 1.0, %v2912_v27 }
 0x955   :  { %v1205_v51 = vadd.f32 1.0, %v1203_v41  ;;  %v1202_v52 = vmul.f32 0.3275911, %v1200_v49  ;;  %v1226_v55 = vsub.f32 0.0, %v1200_v49  ;;  %v1229_v56 = vmul.f32 %v1227_v54, %v1201_v38 }
 0x956   :  { %v1192_v38 = vmul.f32 0.5, %v1184_v37 }
 0x957   :  { %2870 = vrcp.f32 %v1205_v51  ;;  %v1204_v53 = vadd.f32 1.0, %v1202_v52  ;;  %v1228_v44 = vmul.f32 %v1226_v55, %v1200_v49  ;;  %v1232_v39 = vmul.f32 1.442695, %v1229_v56 }
 0x958   :  { %v1193_v49 = vmul.f32 0.5, %v1189_v34  ;;  %v2432_v34 = vld [vmem:[%s3611_s16] ss:$0 sm:$0xff] }
 0x959   :  { %2872 = vrcp.f32 %v1204_v53  ;;  %v1230_v63 = vmul.f32 1.442695, %v1228_v44 }
 0x95a   :  { %2874 = vpow2.f32 %v1232_v39 }
 0x95b   :  { %2876 = vpow2.f32 %v1230_v63  ;;  %v2841_v63 = vld [vmem:[%s3602_s7 + $0x10] sm:$0xff]  }
 0x964   :  { %v2871_v57 = vpop.eup %2870 }
 0x965   :  { %v1209_v58 = vmul.f32 1.0614054, %v2871_v57 }
 0x966   :  { %v2873_v60 = vpop.eup %2872 }
 0x967   :  { %v1211_v62 = vadd.f32 -1.4531521, %v1209_v58  ;;  %v1208_v0 = vmul.f32 1.0614054, %v2873_v60  ;;  %v2875_v19 = vpop.eup %2874 }
 0x968   :  { %v2877_v24 = vpop.eup %2876 }
 0x969   :  { %v1213_v1 = vmul.f32 %v2871_v57, %v1211_v62  ;;  %v1210_v2 = vadd.f32 -1.4531521, %v1208_v0  ;;  %v2840_v62 = vld [vmem:[%s3602_s7 + $0x18] sm:$0xff]  }
 0x96a   :  { %2712 = vmatprep.subr.bf16.mxu1 %v2840_v62 }
 0x96b   :  { %v1215_v3 = vadd.f32 1.4214138, %v1213_v1  ;;  %v1212_v4 = vmul.f32 %v2873_v60, %v1210_v2  ;;  %2713 = vmatpush3.bf16.msra.mxu1 %v2840_v62 }
 0x96c   :  { %2714 = vmatprep.subr.bf16.mxu1 %v2841_v63 }
 0x96d   :  { %v1217_v6 = vmul.f32 %v2871_v57, %v1215_v3  ;;  %v1214_v8 = vadd.f32 1.4214138, %v1212_v4 }
 0x96f   :  { %v1219_v9 = vadd.f32 -0.28449672, %v1217_v6  ;;  %v1216_v10 = vmul.f32 %v2873_v60, %v1214_v8  ;;  %2715 = vmatpush3.bf16.msra.mxu1 %v2841_v63 }
 0x970   :  { %2719 = vmatprep.subr.mxu1 %v2908_v15 }
 0x971   :  { %v1221_v11 = vmul.f32 %v2871_v57, %v1219_v9  ;;  %v1218_v12 = vadd.f32 -0.28449672, %v1216_v10  ;;  %v2443_v9 = vld [vmem:[%s3631_s0 + $0x1] ss:$0 sm:$0xff] }
 0x973   :  { %v1223_v13 = vadd.f32 0.2548296, %v1221_v11  ;;  %v1220_v14 = vmul.f32 %v2873_v60, %v1218_v12 }
 0x975   :  { %v1225_v17 = vmul.f32 %v2871_v57, %v1223_v13  ;;  %v1222_v20 = vadd.f32 0.2548296, %v1220_v14  ;;  %v2444_v14 = vld [vmem:[%s3601_s6 + $0x1] ss:$0 sm:$0xff] }
 0x977   :  { %v1235_v21 = vmul.f32 %v2875_v19, %v1225_v17  ;;  %v1224_v23 = vmul.f32 %v2873_v60, %v1222_v20 }
 0x979   :  { %v1237_v26 = vsub.f32 1.0, %v1235_v21  ;;  %v1234_v29 = vmul.f32 %v2877_v24, %v1224_v23  ;;  %v2450_v23 = vld [vmem:[%s3603_s8 + $0x1] ss:$0 sm:$0xff] }
 0x97b   :  { %v1239_v30 = vmul.f32 %v1237_v26, %v1199_v28  ;;  %v1236_v31 = vsub.f32 1.0, %v1234_v29 }
 0x97d   :  { %v1238_v33 = vmul.f32 %v1236_v31, %v1198_v32  ;;  %v1241_v35 = vadd.f32 1.0, %v1239_v30 }
 0x97f   :  { %v1240_v41 = vadd.f32 1.0, %v1238_v33  ;;  %v1243_v36 = vmul.f32 %v1241_v35, %v1193_v49 }
 0x981   :  { %v1242_v51 = vmul.f32 %v1240_v41, %v1192_v38 }
 0x983   :  { %2709 = vmatprep.mubr.f32.mxu0 %v1242_v51 }
 0x984   :  { %2710 = vmatmul.mubr.f32.vlgmr.msra.gmra.mxu0 %v1243_v36 }
 0x985   :  { %2742 = vmatpush3.msra.mxu0 %v3208_v42 }
 0x986   :  { %2743 = vmatprep.subr.mxu0 %v3215_v43 }
 0x987   :  { %2744 = vmatpush3.msra.mxu0 %v3215_v43 }
 0x988   :  { %2745 = vmatprep.subr.mxu0 %v3221_v45 }
 0x989   :  { %2746 = vmatpush3.msra.mxu0 %v3221_v45 }
 0x98a   :  { %2747 = vmatprep.subr.mxu0 %v3229_v46 }
 0x98b   :  { %2748 = vmatpush3.msra.mxu0 %v3229_v46 }
 0x98c   :  { %2752 = vmatprep.subr.mxu0 %v2908_v15 }
 0xa44   :  { %v2711_v37 = vpop.f32.mrf.mxu0 }
 0xa45   :  { %v1355_v42 = vadd.f32 %v2711_v37, %v2432_v34 }
 0xa46   :  { %v1349_v40 = vpop.f32.mrf.mxu0 }
 0xa47   :  { %v3379_v52 = vadd.f32 %v1355_v42, %v3310_v48  ;;  %v1350_v43 = vadd.f32 %v2432_v34, %v1349_v40 }
 0xa49   :  { %v3382_v53 = vadd.f32 %v1350_v43, %v3313_v50  ;;  %v1367_v45 = vsel %vm369_vm4, %v3379_v52, 0.0 }
 0xa4a   :  { %1368 = vadd.xlane.f32.xlu1 %v1367_v45 }
 0xa4b   :  { %v1364_v46 = vsel %vm369_vm4, %v3382_v53, 0.0 }
 0xa4c   :  { %1365 = vadd.xlane.f32.xlu0 %v1364_v46 }
 0xad3   :  { %v1369_v54 = vpop.xlane.xlu1 %1368 }
 0xad4   :  { %v1371_v55 = vmul.f32 0.03125, %v1369_v54 }
 0xad5   :  { %v1366_v56 = vpop.xlane.xlu0 %1365 }
 0xad6   :  { %v1373_v57 = vsub.f32 %v3379_v52, %v1371_v55  ;;  %v1370_v44 = vmul.f32 0.03125, %v1366_v56 }
 0xad8   :  { %v1372_v48 = vsub.f32 %v3382_v53, %v1370_v44  ;;  %v1375_v58 = vmul.f32 %v1373_v57, %v1373_v57 }
 0xada   :  { %v1379_v50 = vsel %vm369_vm4, %v1375_v58, 0.0  ;;  %v1374_v39 = vmul.f32 %v1372_v48, %v1372_v48 }
 0xadb   :  { %1380 = vadd.xlane.f32.xlu1 %v1379_v50 }
 0xadc   :  { %v1376_v60 = vsel %vm369_vm4, %v1374_v39, 0.0 }
 0xadd   :  { %1377 = vadd.xlane.f32.xlu0 %v1376_v60 }
 0xb64   :  { %v1381_v0 = vpop.xlane.xlu1 %1380 }
 0xb65   :  { %v1383_v1 = vmul.f32 0.03125, %v1381_v0 }
 0xb66   :  { %v1378_v2 = vpop.xlane.xlu0 %1377 }
 0xb67   :  { %v1385_v3 = vadd.f32 1e-06, %v1383_v1  ;;  %v1382_v4 = vmul.f32 0.03125, %v1378_v2 }
 0xb69   :  { %2878 = vrsqrt.f32 %v1385_v3  ;;  %v1384_v6 = vadd.f32 1e-06, %v1382_v4 }
 0xb6b   :  { %2880 = vrsqrt.f32 %v1384_v6 }
 0xb76   :  { %v2879_v8 = vpop.eup %2878 }
 0xb77   :  { %v1389_v10 = vmul.f32 %v2879_v8, %v1373_v57 }
 0xb78   :  { %v2881_v11 = vpop.eup %2880 }
 0xb79   :  { %v1388_v12 = vmul.f32 %v2881_v11, %v1372_v48  ;;  %v1397_v13 = vmul.f32 %v2443_v9, %v1389_v10  ;;  %v2842_v11 = vld [vmem:[%s3604_s9 + $0x18] sm:$0xff]  }
 0xb7b   :  { %v1396_v17 = vmul.f32 %v2443_v9, %v1388_v12  ;;  %v1405_v20 = vadd.f32 %v2444_v14, %v1397_v13 }
 0xb7d   :  { %v1404_v19 = vadd.f32 %v2444_v14, %v1396_v17 }
 0xb7f   :  { %2716 = vmatprep.mubr.msk.f32.mxu1 %vm369_vm4, %v1404_v19 }
 0xb80   :  { %2717 = vmatmul.mubr.msk.f32.vlgmr.msra.gmra.mxu1 %vm369_vm4, %v1405_v20 }
 0xb81   :  { %2727 = vmatprep.mubr.msk.f32.mxu1 %vm2910_vm5, %v2908_v15 }
 0xc40   :  { %v2718_v21 = vpop.f32.mrf.mxu1 }
 0xc41   :  { %v3414_v28 = vadd.f32 %v2718_v21, %v2450_v23 }
 0xc42   :  { %v1471_v24 = vpop.f32.mrf.mxu1 }
 0xc43   :  { %v3412_v26 = vadd.f32 %v2450_v23, %v1471_v24  ;;  %v1487_v31 = vmul.f32 %v3414_v28, %v3152_v22  ;;  %v1485_v33 = vmul.f32 %v3414_v28, %v3145_v18  ;;  %v1484_v38 = vmul.f32 %v3414_v28, %v3160_v25 }
 0xc44   :  { %v1494_v58 = vmul.f32 %v3414_v28, %v3268_v5  ;;  %v1493_v50 = vmul.f32 %v3414_v28, %v3256_v61 }
 0xc45   :  { %v1483_v29 = vmul.f32 %v3412_v26, %v3152_v22  ;;  %v1482_v30 = vmul.f32 %v3412_v26, %v3143_v16  ;;  %v1481_v32 = vmul.f32 %v3412_v26, %v3145_v18  ;;  %v1480_v35 = vmul.f32 %v3412_v26, %v3160_v25 }
 0xc46   :  { %v1486_v22 = vmul.f32 %v3414_v28, %v3143_v16  ;;  %v1491_v56 = vmul.f32 %v3412_v26, %v3251_v59  ;;  %v1490_v57 = vmul.f32 %v3412_v26, %v3268_v5  ;;  %v1489_v44 = vmul.f32 %v3412_v26, %v3256_v61 }
 0xc47   :  { %1506 = vrot.lane.b32.xlu0 %v1483_v29, %s2909_s22  ;;  %1504 = vrot.lane.b32.xlu1 %v1482_v30, %s2909_s22  ;;  %v1488_v48 = vmul.f32 %v3412_v26, %v3273_v7 }
 0xc4b   :  { %1599 = vrot.lane.b32.xlu0 %v1487_v31, %s2909_s22  ;;  %1502 = vrot.lane.b32.xlu1 %v1481_v32, %s2909_s22 }
 0xc4f   :  { %1595 = vrot.lane.b32.xlu0 %v1485_v33, %s2909_s22  ;;  %1500 = vrot.lane.b32.xlu1 %v1480_v35, %s2909_s22 }
 0xc53   :  { %1597 = vrot.lane.b32.xlu1 %v1486_v22, %s2909_s22 }
 0xc57   :  { %1593 = vrot.lane.b32.xlu1 %v1484_v38, %s2909_s22 }
 0xcb9   :  { %v1507_v41 = vpop.permute.xlu0 %1506  ;;  %v1505_v49 = vpop.permute.xlu1 %1504 }
 0xcba   :  { %2720 = vmatpush3.xpose.msk.msra.mxu1 %vm369_vm4, %v1507_v41 }
 0xcbb   :  { %2721 = vmatprep.subr.mxu1 %v2908_v15 }
 0xcbd   :  { %v1503_v18 = vpop.permute.xlu1 %1502  ;;  %v1600_v25 = vpop.permute.xlu0 %1599 }
 0xcbe   :  { %2722 = vmatpush3.xpose.msk.msra.mxu1 %vm369_vm4, %v1505_v49 }
 0xcbf   :  { %2723 = vmatprep.subr.mxu1 %v2908_v15 }
 0xcc1   :  { %v1501_v16 = vpop.permute.xlu1 %1500  ;;  %v1596_v36 = vpop.permute.xlu0 %1595 }
 0xcc2   :  { %2724 = vmatpush3.xpose.msk.msra.mxu1 %vm369_vm4, %v1503_v18 }
 0xcc3   :  { %2725 = vmatprep.subr.mxu1 %v2908_v15 }
 0xcc5   :  { %v1598_v51 = vpop.permute.xlu1 %1597 }
 0xcc6   :  { %2726 = vmatpush3.xpose.msk.msra.mxu1 %vm369_vm4, %v1501_v16 }
 0xcc7   :  { %2730 = vmatprep.subr.mxu1 %v2908_v15 }
 0xcc9   :  { %2728 = vmatmul.mubr.msk.f32.vlgmr.msra.gmra.mxu1 %vm369_vm4, %v3412_v26  ;;  %v1594_v34 = vpop.permute.xlu1 %1593 }
 0xcca   :  { %2731 = vmatpush3.xpose.msk.msra.mxu1 %vm369_vm4, %v1600_v25  ;;  %2738 = vmatprep.mubr.msk.f32.mxu1 %vm2910_vm5, %v2908_v15 }
 0xccb   :  { %2732 = vmatprep.subr.mxu1 %v2908_v15 }
 0xcce   :  { %2733 = vmatpush3.xpose.msk.msra.mxu1 %vm369_vm4, %v1598_v51 }
 0xccf   :  { %2734 = vmatprep.subr.mxu1 %v2908_v15 }
 0xcd2   :  { %2735 = vmatpush3.xpose.msk.msra.mxu1 %vm369_vm4, %v1596_v36 }
 0xcd3   :  { %2736 = vmatprep.subr.mxu1 %v2908_v15 }
 0xcd6   :  { %2737 = vmatpush3.xpose.msk.msra.mxu1 %vm369_vm4, %v1594_v34 }
 0xcd7   :  { %2763 = vmatprep.subr.mxu1 %v2908_v15 }
 0xcd9   :  { %2739 = vmatmul.mubr.msk.f32.vlgmr.msra.gmra.mxu1 %vm369_vm4, %v3414_v28 }
 0xcda   :  { %2771 = vmatprep.mubr.msk.f32.mxu1 %vm2910_vm5, %v2908_v15 }
 0xd89   :  { %v1585_v37 = vpop.f32.mrf.mxu1 }
 0xd8a   :  { %v1682_v42 = vadd.f32 %v3237_v47, %v1585_v37  ;;  %v2844_v37 = vld [vmem:[%s3608_s13 + $0x18] sm:$0xff]  }
 0xd8b   :  { %v2729_v40 = vpop.f32.mrf.mxu1 }
 0xd8c   :  { %v1684_v43 = vsel %vm369_vm4, %v1682_v42, -inf }
 0xd8d   :  { %1685 = vmax.xlane.f32.xlu0 %v1684_v43 }
 0xd99   :  { %v1678_v45 = vpop.f32.mrf.mxu1 }
 0xd9a   :  { %v1683_v46 = vadd.f32 %v3237_v47, %v1678_v45  ;;  %v1495_v47 = vmul.f32 %v3414_v28, %v3251_v59  ;;  %v1492_v59 = vmul.f32 %v3414_v28, %v3273_v7  ;;  %v2474_v28 = vld [vmem:[%s3605_s10 + $0x1] ss:$0 sm:$0xff] }
 0xd9b   :  { %v2740_v54 = vpop.f32.mrf.mxu1 }
 0xd9c   :  { %v1687_v55 = vsel %vm369_vm4, %v1683_v46, -inf }
 0xd9d   :  { %1688 = vmax.xlane.f32.xlu1 %v1687_v55 }
 0xda3   :  { %1791 = vrot.lane.b32.xlu0 %v1491_v56, %s2911_s20 }
 0xda7   :  { %1789 = vrot.lane.b32.xlu0 %v1490_v57, %s2911_s20  ;;  %v2481_v57 = vld [vmem:[%s3606_s11 + $0x1] ss:$0 sm:$0xff] }
 0xdab   :  { %1787 = vrot.lane.b32.xlu0 %v1489_v44, %s2911_s20 }
 0xdae   :  { %1880 = vrot.lane.b32.xlu1 %v1495_v47, %s2911_s20  ;;  %v2482_v47 = vld [vmem:[%s3607_s12 + $0x1] ss:$0 sm:$0xff] }
 0xdaf   :  { %1785 = vrot.lane.b32.xlu0 %v1488_v48, %s2911_s20 }
 0xdb2   :  { %1878 = vrot.lane.b32.xlu1 %v1494_v58, %s2911_s20 }
 0xdb6   :  { %1876 = vrot.lane.b32.xlu1 %v1493_v50, %s2911_s20 }
 0xdba   :  { %1874 = vrot.lane.b32.xlu1 %v1492_v59, %s2911_s20 }
 0xe16   :  { %v1686_v39 = vpop.xlane.xlu0 %1685 }
 0xe17   :  { %v1690_v60 = vsub.f32 %v1682_v42, %v1686_v39  ;;  %v2845_v42 = vld [vmem:[%s3608_s13 + $0x10] sm:$0xff]  }
 0xe19   :  { %v1692_v62 = vmul.f32 1.442695, %v1690_v60 }
 0xe1a   :  { %v1792_v61 = vpop.permute.xlu0 %1791 }
 0xe1b   :  { %2882 = vpow2.f32 %v1692_v62  ;;  %v2846_v62 = vld [vmem:[%s3610_s15 + $0x78] sm:$0xff]  }
 0xe1e   :  { %v1790_v4 = vpop.permute.xlu0 %1789 }
 0xe22   :  { %v1788_v9 = vpop.permute.xlu0 %1787 }
 0xe26   :  { %v1689_v63 = vpop.xlane.xlu1 %1688  ;;  %v1786_v10 = vpop.permute.xlu0 %1785 }
 0xe27   :  { %v1691_v0 = vsub.f32 %v1683_v46, %v1689_v63  ;;  %v2847_v63 = vld [vmem:[%s3610_s15 + $0x70] sm:$0xff]  }
 0xe28   :  { %v2883_v1 = vpop.eup %2882 }
 0xe29   :  { %v1694_v5 = vmul.f32 1.442695, %v1691_v0  ;;  %2749 = vmatprep.mubr.msk.f32.mxu0 %vm369_vm4, %v2883_v1  ;;  %v2848_v0 = vld [vmem:[%s3610_s15 + $0x68] sm:$0xff]  }
 0xe2a   :  { %v1881_v2 = vpop.permute.xlu1 %1880 }
 0xe2b   :  { %2884 = vpow2.f32 %v1694_v5  ;;  %2764 = vmatpush3.msra.mxu1 %v1881_v2  ;;  %v2850_v5 = vld [vmem:[%s3610_s15 + $0x58] sm:$0xff]   ;;  %v2851_v2 = vld [vmem:[%s3610_s15 + $0x50] sm:$0xff]  }
 0xe2c   :  { %2765 = vmatprep.subr.mxu1 %v2908_v15 }
 0xe2e   :  { %v1879_v3 = vpop.permute.xlu1 %1878 }
 0xe2f   :  { %2766 = vmatpush3.msra.mxu1 %v1879_v3  ;;  %v2853_v3 = vld [vmem:[%s3610_s15 + $0x40] sm:$0xff]  }
 0xe30   :  { %2767 = vmatprep.subr.mxu1 %v2908_v15 }
 0xe32   :  { %v1877_v7 = vpop.permute.xlu1 %1876 }
 0xe33   :  { %2768 = vmatpush3.msra.mxu1 %v1877_v7  ;;  %v2488_v7 = vld [vmem:[%s3609_s14 + $0x1] ss:$0 sm:$0xff] }
 0xe34   :  { %2769 = vmatprep.subr.mxu1 %v2908_v15 }
 0xe36   :  { %v1875_v6 = vpop.permute.xlu1 %1874 }
 0xe37   :  { %2770 = vmatpush3.msra.mxu1 %v1875_v6 }
 0xe38   :  { %v2885_v8 = vpop.eup %2884  ;;  %2781 = vmatprep.subr.bf16.mxu1 %v2844_v37 }
 0xe39   :  { %2750 = vmatmul.mubr.msk.f32.vlgmr.msra.gmra.mxu0 %vm369_vm4, %v2885_v8 }
 0xe3a   :  { %2753 = vmatpush3.msra.mxu0 %v1792_v61  ;;  %2760 = vmatprep.mubr.msk.f32.mxu0 %vm2910_vm5, %v2908_v15  ;;  %v2852_v61 = vld [vmem:[%s3610_s15 + $0x48] sm:$0xff]  }
 0xe3b   :  { %2754 = vmatprep.subr.mxu0 %v2908_v15 }
 0xe3c   :  { %2755 = vmatpush3.msra.mxu0 %v1790_v4 }
 0xe3d   :  { %2756 = vmatprep.subr.mxu0 %v2908_v15 }
 0xe3e   :  { %2757 = vmatpush3.msra.mxu0 %v1788_v9 }
 0xe3f   :  { %2758 = vmatprep.subr.mxu0 %v2908_v15  ;;  %v2843_v15 = vld [vmem:[%s3604_s9 + $0x10] sm:$0xff]  }
 0xe40   :  { %2759 = vmatpush3.msra.mxu0 %v1786_v10 }
 0xe41   :  { %2774 = vmatprep.subr.bf16.mxu0 %v2842_v11 }
 0xef9   :  { %v2751_v12 = vpop.f32.mrf.mxu0 }
 0xefa   :  { %2886 = vrcp.f32 %v2751_v12 }
 0xefb   :  { %v1768_v13 = vpop.f32.mrf.mxu0 }
 0xefc   :  { %2888 = vrcp.f32 %v1768_v13 }
 0xf07   :  { %v2887_v14 = vpop.eup %2886 }
 0xf08   :  { %v1780_v17 = vmul.f32 %v2887_v14, %v2885_v8 }
 0xf09   :  { %v2889_v19 = vpop.eup %2888 }
 0xf0a   :  { %2772 = vmatmul.mubr.msk.f32.vlgmr.msra.gmra.mxu1 %vm369_vm4, %v1780_v17  ;;  %v1779_v20 = vmul.f32 %v2889_v19, %v2883_v1  ;;  %v2849_v1 = vld [vmem:[%s3610_s15 + $0x60] sm:$0xff]  }
 0xf0b   :  { %2782 = vmatpush3.bf16.msra.mxu1 %v2844_v37 }
 0xf0c   :  { %2761 = vmatmul.mubr.msk.f32.vlgmr.msra.gmra.mxu0 %vm369_vm4, %v1779_v20  ;;  %2783 = vmatprep.subr.bf16.mxu1 %v2845_v42 }
 0xf0d   :  { %2775 = vmatpush3.bf16.msra.mxu0 %v2842_v11 }
 0xf0e   :  { %2776 = vmatprep.subr.bf16.mxu0 %v2843_v15 }
 0xf0f   :  { %2784 = vmatpush3.bf16.msra.mxu1 %v2845_v42 }
 0xf11   :  { %2777 = vmatpush3.bf16.msra.mxu0 %v2843_v15 }
 0xf12   :  { %2788 = vmatprep.subr.bf16.mxu0 %v2846_v62 }
 0xfca   :  { %v1955_v21 = vpop.f32.mrf.mxu1 }
 0xfcc   :  { %v1866_v23 = vpop.f32.mrf.mxu0  ;;  %v2773_v24 = vpop.f32.mrf.mxu1 }
 0xfcd   :  { %2778 = vmatprep.mubr.msk.f32.mxu0 %vm369_vm4, %v1866_v23 }
 0xfce   :  { %v2762_v26 = vpop.f32.mrf.mxu0  ;;  %2779 = vmatmul.mubr.msk.f32.vlgmr.msra.gmra.mxu0 %vm369_vm4, %v1955_v21 }
 0xfcf   :  { %2789 = vmatpush3.bf16.msra.mxu0 %v2846_v62 }
 0xfd0   :  { %2790 = vmatprep.subr.bf16.mxu0 %v2847_v63 }
 0xfd3   :  { %2791 = vmatpush3.bf16.msra.mxu0 %v2847_v63 }
 0xfd4   :  { %2792 = vmatprep.subr.bf16.mxu0 %v2848_v0 }
 0xfd7   :  { %2793 = vmatpush3.bf16.msra.mxu0 %v2848_v0  ;;  %v2510_v0 = vld [vmem:[%s3611_s16 + $0x1] ss:$0 sm:$0xff] }
 0xfd8   :  { %2794 = vmatprep.subr.bf16.mxu0 %v2849_v1 }
 0xfdb   :  { %2795 = vmatpush3.bf16.msra.mxu0 %v2849_v1 }
 0xfdc   :  { %2796 = vmatprep.subr.bf16.mxu0 %v2850_v5 }
 0xfdf   :  { %2797 = vmatpush3.bf16.msra.mxu0 %v2850_v5 }
 0xfe0   :  { %2798 = vmatprep.subr.bf16.mxu0 %v2851_v2 }
 0xfe3   :  { %2799 = vmatpush3.bf16.msra.mxu0 %v2851_v2 }
 0xfe4   :  { %2800 = vmatprep.subr.bf16.mxu0 %v2852_v61 }
 0xfe7   :  { %2801 = vmatpush3.bf16.msra.mxu0 %v2852_v61 }
 0xfe8   :  { %2802 = vmatprep.subr.bf16.mxu0 %v2853_v3 }
 0xfeb   :  { %2803 = vmatpush3.bf16.msra.mxu0 %v2853_v3 }
0x108e   :  { %v2780_v29 = vpop.f32.mrf.mxu0 }
0x108f   :  { %v2030_v30 = vadd.f32 %v2780_v29, %v2474_v28 }
0x1090   :  { %v2024_v31 = vpop.f32.mrf.mxu0 }
0x1091   :  { %v3516_v32 = vadd.f32 %v2030_v30, %v3379_v52  ;;  %v2025_v33 = vadd.f32 %v2474_v28, %v2024_v31 }
0x1093   :  { %v3519_v35 = vadd.f32 %v2025_v33, %v3382_v53  ;;  %v2042_v22 = vsel %vm369_vm4, %v3516_v32, 0.0 }
0x1094   :  { %2043 = vadd.xlane.f32.xlu1 %v2042_v22 }
0x1095   :  { %v2039_v38 = vsel %vm369_vm4, %v3519_v35, 0.0 }
0x1096   :  { %2040 = vadd.xlane.f32.xlu0 %v2039_v38 }
0x111d   :  { %v2044_v41 = vpop.xlane.xlu1 %2043 }
0x111e   :  { %v2046_v49 = vmul.f32 0.03125, %v2044_v41 }
0x111f   :  { %v2041_v18 = vpop.xlane.xlu0 %2040 }
0x1120   :  { %v2045_v16 = vmul.f32 0.03125, %v2041_v18  ;;  %v2048_v25 = vsub.f32 %v3516_v32, %v2046_v49 }
0x1122   :  { %v2047_v52 = vsub.f32 %v3519_v35, %v2045_v16  ;;  %v2050_v36 = vmul.f32 %v2048_v25, %v2048_v25 }
0x1124   :  { %v2049_v51 = vmul.f32 %v2047_v52, %v2047_v52  ;;  %v2054_v34 = vsel %vm369_vm4, %v2050_v36, 0.0 }
0x1126   :  { %v2051_v53 = vsel %vm369_vm4, %v2049_v51, 0.0 }
0x1127   :  { %2052 = vadd.xlane.f32.xlu0 %v2051_v53 }
0x112b   :  { %2055 = vadd.xlane.f32.xlu0 %v2054_v34 }
0x11b0   :  { %v2053_v40 = vpop.xlane.xlu0 %2052 }
0x11b1   :  { %v2057_v43 = vmul.f32 0.03125, %v2053_v40 }
0x11b3   :  { %v2059_v45 = vadd.f32 1e-06, %v2057_v43 }
0x11b4   :  { %v2056_v46 = vpop.xlane.xlu0 %2055 }
0x11b5   :  { %2890 = vrsqrt.f32 %v2059_v45  ;;  %v2058_v54 = vmul.f32 0.03125, %v2056_v46 }
0x11b7   :  { %v2060_v55 = vadd.f32 1e-06, %v2058_v54 }
0x11b9   :  { %2892 = vrsqrt.f32 %v2060_v55 }
0x11c2   :  { %v2891_v56 = vpop.eup %2890 }
0x11c3   :  { %v2063_v44 = vmul.f32 %v2891_v56, %v2047_v52 }
0x11c5   :  { %v2071_v48 = vmul.f32 %v2481_v57, %v2063_v44 }
0x11c6   :  { %v2893_v58 = vpop.eup %2892 }
0x11c7   :  { %v2064_v50 = vmul.f32 %v2893_v58, %v2048_v25  ;;  %v2079_v59 = vadd.f32 %v2482_v47, %v2071_v48 }
0x11c9   :  { %v2072_v39 = vmul.f32 %v2481_v57, %v2064_v50  ;;  %2785 = vmatprep.mubr.msk.f32.mxu1 %vm369_vm4, %v2079_v59 }
0x11cb   :  { %v2080_v60 = vadd.f32 %v2482_v47, %v2072_v39 }
0x11cd   :  { %2786 = vmatmul.mubr.msk.f32.vlgmr.msra.gmra.mxu1 %vm369_vm4, %v2080_v60 }
0x128d   :  { %v2787_v4 = vpop.f32.mrf.mxu1 }
0x128e   :  { %v2152_v6 = vadd.f32 %v2787_v4, %v2488_v7 }
0x128f   :  { %v2146_v8 = vpop.f32.mrf.mxu1 }
0x1290   :  { %v2158_v9 = vmul.f32 0.70710677, %v2152_v6  ;;  %v2147_v10 = vadd.f32 %v2488_v7, %v2146_v8  ;;  %v2156_v60 = vmul.f32 0.5, %v2152_v6 }
0x1292   :  { %v2164_v11 = vand.u32 2147483647, %v2158_v9  ;;  %v2157_v12 = vmul.f32 0.70710677, %v2147_v10  ;;  %vm2160_vm8 = vcmp.ge.f32.partialorder %v2158_v9, 0.0  ;;  %v2155_v59 = vmul.f32 0.5, %v2147_v10 }
0x1293   :  { %v2162_v56 = vsel %vm2160_vm8, 1.0, %v2912_v27 }
0x1294   :  { %v2166_v13 = vmul.f32 0.3275911, %v2164_v11  ;;  %v2163_v14 = vand.u32 2147483647, %v2157_v12  ;;  %v2190_v15 = vsub.f32 0.0, %v2164_v11  ;;  %vm2159_vm9 = vcmp.ge.f32.partialorder %v2157_v12, 0.0 }
0x1295   :  { %v2161_v48 = vsel %vm2159_vm9, 1.0, %v2912_v27 }
0x1296   :  { %v2168_v17 = vadd.f32 1.0, %v2166_v13  ;;  %v2165_v19 = vmul.f32 0.3275911, %v2163_v14  ;;  %v2189_v21 = vsub.f32 0.0, %v2163_v14  ;;  %v2192_v23 = vmul.f32 %v2190_v15, %v2164_v11 }
0x1298   :  { %2894 = vrcp.f32 %v2168_v17  ;;  %v2167_v20 = vadd.f32 1.0, %v2165_v19  ;;  %v2191_v26 = vmul.f32 %v2189_v21, %v2163_v14  ;;  %v2195_v29 = vmul.f32 1.442695, %v2192_v23 }
0x129a   :  { %2896 = vrcp.f32 %v2167_v20  ;;  %v2193_v33 = vmul.f32 1.442695, %v2191_v26  ;;  %v2519_v26 = vld [vmem:[%s3612_s17] ss:$0 sm:$0xff] }
0x129b   :  { %2898 = vpow2.f32 %v2195_v29 }
0x129c   :  { %2900 = vpow2.f32 %v2193_v33 }
0x12a5   :  { %v2895_v24 = vpop.eup %2894 }
0x12a6   :  { %v2172_v28 = vmul.f32 1.0614054, %v2895_v24 }
0x12a7   :  { %v2897_v30 = vpop.eup %2896 }
0x12a8   :  { %v2174_v31 = vadd.f32 -1.4531521, %v2172_v28  ;;  %v2171_v22 = vmul.f32 1.0614054, %v2897_v30  ;;  %v2899_v40 = vpop.eup %2898 }
0x12a9   :  { %v2901_v54 = vpop.eup %2900 }
0x12aa   :  { %v2176_v38 = vmul.f32 %v2895_v24, %v2174_v31  ;;  %v2173_v41 = vadd.f32 -1.4531521, %v2171_v22 }
0x12ac   :  { %v2178_v49 = vadd.f32 1.4214138, %v2176_v38  ;;  %v2175_v18 = vmul.f32 %v2897_v30, %v2173_v41 }
0x12ae   :  { %v2180_v16 = vmul.f32 %v2895_v24, %v2178_v49  ;;  %v2177_v25 = vadd.f32 1.4214138, %v2175_v18 }
0x12b0   :  { %v2182_v52 = vadd.f32 -0.28449672, %v2180_v16  ;;  %v2179_v51 = vmul.f32 %v2897_v30, %v2177_v25 }
0x12b2   :  { %v2184_v53 = vmul.f32 %v2895_v24, %v2182_v52  ;;  %v2181_v36 = vadd.f32 -0.28449672, %v2179_v51 }
0x12b4   :  { %v2186_v34 = vadd.f32 0.2548296, %v2184_v53  ;;  %v2183_v37 = vmul.f32 %v2897_v30, %v2181_v36 }
0x12b6   :  { %v2188_v42 = vmul.f32 %v2895_v24, %v2186_v34  ;;  %v2185_v43 = vadd.f32 0.2548296, %v2183_v37 }
0x12b8   :  { %v2198_v45 = vmul.f32 %v2899_v40, %v2188_v42  ;;  %v2187_v46 = vmul.f32 %v2897_v30, %v2185_v43  ;;  %v2520_v30 = vld [vmem:[%s3613_s18] ss:$0 sm:$0xff] }
0x12ba   :  { %v2200_v55 = vsub.f32 1.0, %v2198_v45  ;;  %v2197_v57 = vmul.f32 %v2901_v54, %v2187_v46 }
0x12bc   :  { %v2202_v44 = vmul.f32 %v2200_v55, %v2162_v56  ;;  %v2199_v47 = vsub.f32 1.0, %v2197_v57 }
0x12be   :  { %v2201_v58 = vmul.f32 %v2199_v47, %v2161_v48  ;;  %v2204_v50 = vadd.f32 1.0, %v2202_v44 }
0x12c0   :  { %v2203_v39 = vadd.f32 1.0, %v2201_v58  ;;  %v2206_v63 = vmul.f32 %v2204_v50, %v2156_v60 }
0x12c2   :  { %v2205_v62 = vmul.f32 %v2203_v39, %v2155_v59 }
0x12c4   :  { %2804 = vmatprep.mubr.f32.mxu0 %v2205_v62 }
0x12c5   :  { %2805 = vmatmul.mubr.f32.vlgmr.msra.gmra.mxu0 %v2206_v63 }
0x1385   :  { %v2806_v1 = vpop.f32.mrf.mxu0 }
0x1386   :  { %v2320_v5 = vadd.f32 %v2806_v1, %v2510_v0 }
0x1387   :  { %v2314_v2 = vpop.f32.mrf.mxu0 }
0x1388   :  { %v2315_v61 = vadd.f32 %v2510_v0, %v2314_v2  ;;  %v2324_v3 = vadd.f32 %v2320_v5, %v3516_v32 }
0x138a   :  { %v2330_v27 = vsel %vm369_vm4, %v2324_v3, 0.0  ;;  %v2323_v7 = vadd.f32 %v2315_v61, %v3519_v35 }
0x138b   :  { %2331 = vadd.xlane.f32.xlu1 %v2330_v27 }
0x138c   :  { %v2327_v4 = vsel %vm369_vm4, %v2323_v7, 0.0 }
0x138d   :  { %2328 = vadd.xlane.f32.xlu0 %v2327_v4 }
0x1414   :  { %v2332_v6 = vpop.xlane.xlu1 %2331 }
0x1415   :  { %v2334_v8 = vmul.f32 0.03125, %v2332_v6 }
0x1416   :  { %v2329_v9 = vpop.xlane.xlu0 %2328 }
0x1417   :  { %v2336_v10 = vsub.f32 %v2324_v3, %v2334_v8  ;;  %v2333_v11 = vmul.f32 0.03125, %v2329_v9 }
0x1419   :  { %v2335_v12 = vsub.f32 %v2323_v7, %v2333_v11  ;;  %v2338_v13 = vmul.f32 %v2336_v10, %v2336_v10 }
0x141b   :  { %v2342_v14 = vsel %vm369_vm4, %v2338_v13, 0.0  ;;  %v2337_v17 = vmul.f32 %v2335_v12, %v2335_v12 }
0x141c   :  { %2343 = vadd.xlane.f32.xlu1 %v2342_v14 }
0x141d   :  { %v2339_v32 = vsel %vm369_vm4, %v2337_v17, 0.0 }
0x141e   :  { %2340 = vadd.xlane.f32.xlu0 %v2339_v32 }
0x14a5   :  { %v2344_v19 = vpop.xlane.xlu1 %2343 }
0x14a6   :  { %v2346_v35 = vmul.f32 0.03125, %v2344_v19 }
0x14a7   :  { %v2341_v20 = vpop.xlane.xlu0 %2340 }
0x14a8   :  { %v2348_v15 = vadd.f32 1e-06, %v2346_v35  ;;  %v2345_v21 = vmul.f32 0.03125, %v2341_v20 }
0x14aa   :  { %2902 = vrsqrt.f32 %v2348_v15  ;;  %v2347_v23 = vadd.f32 1e-06, %v2345_v21 }
0x14ac   :  { %2904 = vrsqrt.f32 %v2347_v23 }
0x14b7   :  { %v2903_v24 = vpop.eup %2902 }
0x14b8   :  { %v2352_v28 = vmul.f32 %v2903_v24, %v2336_v10 }
0x14b9   :  { %v2905_v29 = vpop.eup %2904 }
0x14ba   :  { %v2360_v31 = vmul.f32 %v2519_v26, %v2352_v28  ;;  %v2351_v33 = vmul.f32 %v2905_v29, %v2335_v12 }
0x14bc   :  { %v2368_v22 = vadd.f32 %v2520_v30, %v2360_v31  ;;  %v2359_v38 = vmul.f32 %v2519_v26, %v2351_v33 }
0x14be   :  { %2370 = vst.msk [vmem:[%s3616_s21 + $0x8] sm:$0xff] %vm369_vm4, %v2368_v22  ;;  %v2367_v41 = vadd.f32 %v2520_v30, %v2359_v38 }
0x14c0   :  { %2369 = vst.msk [vmem:[%s3616_s21] sm:$0xff] %vm369_vm4, %v2367_v41 }

</bundles_post_ra>
